<compile_context>
chip_gen: v6e
topology: v6e:2x2x1
jax: 0.10.0
libtpu: 0.0.40
codegen_flags: <defaults>
</compile_context>

<pallas_src>
import functools

import jax
import jax.numpy as jnp
from jax import lax
from jax.experimental import pallas as pl
from jax.experimental.pallas import tpu as pltpu


def seq2seq_kernel(x_ref, trg_ref,
                   wih1_ref, b1_ref, wrec_ref, brec_ref, wih2_ref,
                   w1_ref, bf1_ref, w2_ref, bf2_ref, w3_ref, bf3_ref,
                   out_ref, *, seq_len, batch, hidden_size):
    H = hidden_size
    T = seq_len
    Bp = out_ref.shape[0]                      # padded batch (multiple of 8)
    f32 = jnp.float32
    bf16 = jnp.bfloat16

    # ---- Hoisted layer-1 input projection: one (T*Bp, D) @ (D, 4H) bf16 pass.
    xw1 = jnp.dot(x_ref[...], wih1_ref[...],
                  preferred_element_type=f32) + b1_ref[...]        # f32 (T*Bp, 4H)

    # Small weights: load once, stay resident (all bf16 except biases).
    wrec = wrec_ref[...]                       # (2H, 8H) blockdiag(whh1, whh2)
    brec = brec_ref[...]                       # (1, 8H) = [0 ... 0 | b2]
    wih2 = wih2_ref[...]                       # (H, 4H)

    def act(gates, c):
        # Permuted gate layout [ i | f | o | g ]: 1 sigmoid over 3H lanes,
        # 1 tanh over H lanes. All f32 (VPU/EUP friendly on every chip).
        sig = jax.nn.sigmoid(gates[:, :3 * H])
        g = jnp.tanh(gates[:, 3 * H:])
        i, f, o = sig[:, :H], sig[:, H:2 * H], sig[:, 2 * H:]
        c_new = f * c + i * g
        return o * jnp.tanh(c_new), c_new

    h1 = c1 = h2 = c2 = jnp.zeros((Bp, H), f32)
    # Fully unrolled time loop (T is small and static).
    for t in range(T):
        # Single fused recurrent matmul for BOTH layers: concat(h1, h2) @ W_rec.
        # Depends only on previous-step state -> one MXU push per step.
        hh = jnp.concatenate([h1, h2], axis=1).astype(bf16)        # (Bp, 2H)
        rec = jnp.dot(hh, wrec, preferred_element_type=f32) + brec  # (Bp, 8H)
        gates1 = xw1[t * Bp:(t + 1) * Bp] + rec[:, :4 * H]
        h1, c1 = act(gates1, c1)
        gates2 = jnp.dot(h1.astype(bf16), wih2,
                         preferred_element_type=f32) + rec[:, 4 * H:]
        h2, c2 = act(gates2, c2)

    # FC head on the last-step top-layer output (== head(tem_output[:, -1, :])).
    # Weights zero-padded to 128 output lanes -> lane-dense MXU tiles / stores;
    # padded lanes stay exactly 0 through the ReLUs.
    z = jnp.maximum(
        jnp.dot(h2.astype(bf16), w1_ref[...],
                preferred_element_type=f32) + bf1_ref[...], 0.0)    # (Bp, 128)
    z = jnp.maximum(
        jnp.dot(z.astype(bf16), w2_ref[...],
                preferred_element_type=f32) + bf2_ref[...], 0.0)    # (Bp, 128)
    z = jax.nn.sigmoid(
        jnp.dot(z.astype(bf16), w3_ref[...],
                preferred_element_type=f32) + bf3_ref[...])         # (Bp, 128)

    # MSE over the real batch rows, real output column only.
    row = lax.broadcasted_iota(jnp.int32, (Bp, 128), 0)
    col = lax.broadcasted_iota(jnp.int32, (Bp, 128), 1)
    diff = jnp.where((row < batch) & (col == 0), z - trg_ref[...], 0.0)
    loss = jnp.sum(diff * diff) * (1.0 / batch)

    # One lane-dense output slab: col 0 rows 0..Bp-1 = prediction, [0,1] = loss.
    out_ref[...] = jnp.where((row == 0) & (col == 1), loss, z)


def seq2seq_forward(src, trg, params):
    """src: (B, T, D) float, trg: (B,) -> (loss scalar, output (B,))."""
    B, T, D = src.shape
    H = params["whh1"].shape[0]
    Bp = max(8, ((B + 7) // 8) * 8)            # pad batch to sublane width
    f32, bf16 = jnp.float32, jnp.bfloat16

    # Time-major, batch-padded, flattened to (T*Bp, D); bf16 for the MXU.
    x = jnp.transpose(src, (1, 0, 2)).astype(f32)                   # (T, B, D)
    x = jnp.pad(x, ((0, 0), (0, Bp - B), (0, 0))).reshape(T * Bp, D).astype(bf16)
    trg2 = jnp.pad(trg.astype(f32).reshape(B, 1), ((0, Bp - B), (0, 0)))

    def perm(w):
        # Gate columns [i, f, g, o] -> [i, f, o, g] (sigmoid gates contiguous).
        return jnp.concatenate(
            [w[..., :2 * H], w[..., 3 * H:], w[..., 2 * H:3 * H]], axis=-1)

    wih1 = perm(params["wih1"]).astype(bf16)
    b1 = perm(params["b1"])                                        # f32
    whh1 = perm(params["whh1"])
    wih2 = perm(params["wih2"]).astype(bf16)
    whh2 = perm(params["whh2"])
    b2 = perm(params["b2"])                                        # f32

    # Fused block-diagonal recurrent weight (2H, 8H) + bias [0 | b2].
    z4 = jnp.zeros((H, 4 * H), f32)
    wrec = jnp.concatenate(
        [jnp.concatenate([whh1, z4], axis=1),
         jnp.concatenate([z4, whh2], axis=1)], axis=0).astype(bf16)  # (2H, 8H)
    brec = jnp.concatenate([jnp.zeros((1, 4 * H), f32), b2], axis=1)

    # FC head: zero-pad outputs (and inputs where needed) to 128 lanes.
    def pad_to(w, rows, cols):
        return jnp.pad(w, ((0, rows - w.shape[0]), (0, cols - w.shape[1])))

    w1p = pad_to(params["w1"], H, 128).astype(bf16)     # (H, 128)
    w2p = pad_to(params["w2"], 128, 128).astype(bf16)   # (128, 128)
    w3p = pad_to(params["w3"], 128, 128).astype(bf16)   # (128, 128)
    bf1p = pad_to(params["bf1"], 1, 128)
    bf2p = pad_to(params["bf2"], 1, 128)
    bf3p = pad_to(params["bf3"], 1, 128)

    inputs = (x, trg2,
              wih1, b1, wrec, brec, wih2,
              w1p, bf1p, w2p, bf2p, w3p, bf3p)

    vmem = pl.BlockSpec(memory_space=pltpu.MemorySpace.VMEM)
    slab = pl.pallas_call(
        functools.partial(seq2seq_kernel, seq_len=T, batch=B, hidden_size=H),
        out_shape=jax.ShapeDtypeStruct((Bp, 128), jnp.float32),
        in_specs=[vmem] * len(inputs),
        out_specs=vmem,
    )(*inputs)
    return slab[0, 1], slab[:B, 0]


def init_params(key, input_size, hidden_size):
    """Deterministic PyTorch-style uniform(-1/sqrt(H), 1/sqrt(H)) init."""
    H = hidden_size
    keys = jax.random.split(key, 14)

    def u(k, shape, fan_in):
        s = 1.0 / (fan_in ** 0.5)
        return jax.random.uniform(k, shape, jnp.float32, -s, s)

    return dict(
        # LSTM layer 1 (input_size -> H); b = b_ih + b_hh folded. Gate order i,f,g,o.
        wih1=u(keys[0], (input_size, 4 * H), H),
        whh1=u(keys[1], (H, 4 * H), H),
        b1=u(keys[2], (1, 4 * H), H) + u(keys[3], (1, 4 * H), H),
        # LSTM layer 2 (H -> H)
        wih2=u(keys[4], (H, 4 * H), H),
        whh2=u(keys[5], (H, 4 * H), H),
        b2=u(keys[6], (1, 4 * H), H) + u(keys[7], (1, 4 * H), H),
        # FC head
        w1=u(keys[8], (H, 16), H),    bf1=u(keys[9], (1, 16), H),
        w2=u(keys[10], (16, 16), 16), bf2=u(keys[11], (1, 16), 16),
        w3=u(keys[12], (16, 1), 16),  bf3=u(keys[13], (1, 1), 16),
    )


def _reference_forward(src, trg, params):
    """Pure-JAX f32 reference (PyTorch gate order, no permutation/padding)."""
    B, T, D = src.shape
    H = params["whh1"].shape[0]

    def cell(x, h, c, wih, whh, b):
        gates = x @ wih + h @ whh + b
        i = jax.nn.sigmoid(gates[:, :H])
        f = jax.nn.sigmoid(gates[:, H:2 * H])
        g = jnp.tanh(gates[:, 2 * H:3 * H])
        o = jax.nn.sigmoid(gates[:, 3 * H:])
        c = f * c + i * g
        return o * jnp.tanh(c), c

    h1 = c1 = h2 = c2 = jnp.zeros((B, H), jnp.float32)
    for t in range(T):
        h1, c1 = cell(src[:, t, :], h1, c1,
                      params["wih1"], params["whh1"], params["b1"])
        h2, c2 = cell(h1, h2, c2,
                      params["wih2"], params["whh2"], params["b2"])
    z = jnp.maximum(h2 @ params["w1"] + params["bf1"], 0.0)
    z = jnp.maximum(z @ params["w2"] + params["bf2"], 0.0)
    z = jax.nn.sigmoid(z @ params["w3"] + params["bf3"])[:, 0]
    return jnp.mean((z - trg.astype(jnp.float32)) ** 2), z


if __name__ == "__main__":
    # Small shapes consistent with the module: input_size=32, hidden_size=32,
    # num_layers=2, batch=2, seq=8.
    B, T, D, H = 2, 8, 32, 32

    root = jax.random.PRNGKey(0)
    k_src, k_trg, k_par = jax.random.split(root, 3)
    src = jax.random.normal(k_src, (B, T, D), jnp.float32)
    trg = jax.random.uniform(k_trg, (B,), jnp.float32)
    params = init_params(k_par, D, H)

    loss, output = jax.jit(seq2seq_forward)(src, trg, params)
    jax.block_until_ready((loss, output))

    assert output.shape == (B,)
    assert loss.shape == ()

    # bf16 MXU operands (f32 accumulation) -> compare to f32 reference with a
    # slightly loosened tolerance, per the perf-review correctness note.
    ref_loss, ref_out = _reference_forward(src, trg, params)
    assert jnp.allclose(output, ref_out, atol=2e-2, rtol=2e-2), (output, ref_out)
    assert jnp.allclose(loss, ref_loss, atol=2e-2, rtol=2e-2), (loss, ref_loss)

    print("KERNEL_OK")
</pallas_src>

<mosaic_0001>
module attributes {stable_mosaic.version = 11 : i64} {
  func.func @seq2seq_kernel(%arg0: memref<64x32xbf16, #tpu.memory_space<vmem>>, %arg1: memref<8x1xf32, #tpu.memory_space<vmem>>, %arg2: memref<32x128xbf16, #tpu.memory_space<vmem>>, %arg3: memref<1x128xf32, #tpu.memory_space<vmem>>, %arg4: memref<64x256xbf16, #tpu.memory_space<vmem>>, %arg5: memref<1x256xf32, #tpu.memory_space<vmem>>, %arg6: memref<32x128xbf16, #tpu.memory_space<vmem>>, %arg7: memref<32x128xbf16, #tpu.memory_space<vmem>>, %arg8: memref<1x128xf32, #tpu.memory_space<vmem>>, %arg9: memref<128x128xbf16, #tpu.memory_space<vmem>>, %arg10: memref<1x128xf32, #tpu.memory_space<vmem>>, %arg11: memref<128x128xbf16, #tpu.memory_space<vmem>>, %arg12: memref<1x128xf32, #tpu.memory_space<vmem>>, %arg13: memref<8x128xf32, #tpu.memory_space<vmem>>) attributes {dimension_semantics = [], scalar_prefetch = 0 : i64, scratch_operands = 0 : i64, tpu.core_type = #tpu.core_type<tc>} {
    %c0 = arith.constant 0 : index
    %c0_0 = arith.constant 0 : index
    %0 = vector.load %arg0[%c0, %c0_0] : memref<64x32xbf16, #tpu.memory_space<vmem>>, vector<64x32xbf16>
    %c0_1 = arith.constant 0 : index
    %c0_2 = arith.constant 0 : index
    %1 = vector.load %arg2[%c0_1, %c0_2] : memref<32x128xbf16, #tpu.memory_space<vmem>>, vector<32x128xbf16>
    %cst = arith.constant dense<0.000000e+00> : vector<64x128xf32>
    %2 = tpu.matmul %0, %1, %cst {dimension_numbers = #tpu.dot_dimension_numbers<[1], [0], [0], [1], [0, 0, 1, 1], [], []>} : vector<64x32xbf16>, vector<32x128xbf16>, vector<64x128xf32> -> vector<64x128xf32>
    %c0_3 = arith.constant 0 : index
    %c0_4 = arith.constant 0 : index
    %3 = vector.load %arg3[%c0_3, %c0_4] : memref<1x128xf32, #tpu.memory_space<vmem>>, vector<1x128xf32>
    %4 = vector.broadcast %3 : vector<1x128xf32> to vector<64x128xf32>
    %5 = arith.addf %2, %4 : vector<64x128xf32>
    %c0_5 = arith.constant 0 : index
    %c0_6 = arith.constant 0 : index
    %6 = vector.load %arg4[%c0_5, %c0_6] : memref<64x256xbf16, #tpu.memory_space<vmem>>, vector<64x256xbf16>
    %c0_7 = arith.constant 0 : index
    %c0_8 = arith.constant 0 : index
    %7 = vector.load %arg5[%c0_7, %c0_8] : memref<1x256xf32, #tpu.memory_space<vmem>>, vector<1x256xf32>
    %c0_9 = arith.constant 0 : index
    %c0_10 = arith.constant 0 : index
    %8 = vector.load %arg6[%c0_9, %c0_10] : memref<32x128xbf16, #tpu.memory_space<vmem>>, vector<32x128xbf16>
    %cst_11 = arith.constant 0.000000e+00 : f32
    %9 = vector.broadcast %cst_11 : f32 to vector<8x32xf32>
    %10 = tpu.concatenate %9, %9 in 1 : vector<8x32xf32>, vector<8x32xf32> -> vector<8x64xf32>
    %11 = arith.truncf %10 : vector<8x64xf32> to vector<8x64xbf16>
    %cst_12 = arith.constant dense<0.000000e+00> : vector<8x256xf32>
    %12 = tpu.matmul %11, %6, %cst_12 {dimension_numbers = #tpu.dot_dimension_numbers<[1], [0], [0], [1], [0, 0, 1, 1], [], []>} : vector<8x64xbf16>, vector<64x256xbf16>, vector<8x256xf32> -> vector<8x256xf32>
    %13 = vector.broadcast %7 : vector<1x256xf32> to vector<8x256xf32>
    %14 = arith.addf %12, %13 : vector<8x256xf32>
    %15 = vector.extract_strided_slice %5 {offsets = [0, 0], sizes = [8, 128], strides = [1, 1]} : vector<64x128xf32> to vector<8x128xf32>
    %16 = vector.extract_strided_slice %14 {offsets = [0, 0], sizes = [8, 128], strides = [1, 1]} : vector<8x256xf32> to vector<8x128xf32>
    %17 = arith.addf %15, %16 : vector<8x128xf32>
    %18 = vector.extract_strided_slice %17 {offsets = [0, 0], sizes = [8, 96], strides = [1, 1]} : vector<8x128xf32> to vector<8x96xf32>
    %19 = arith.negf %18 : vector<8x96xf32>
    %20 = math.exp %19 : vector<8x96xf32>
    %cst_13 = arith.constant 1.000000e+00 : f32
    %21 = vector.broadcast %cst_13 : f32 to vector<8x96xf32>
    %22 = arith.addf %21, %20 : vector<8x96xf32>
    %23 = arith.divf %21, %22 : vector<8x96xf32>
    %24 = vector.extract_strided_slice %17 {offsets = [0, 96], sizes = [8, 32], strides = [1, 1]} : vector<8x128xf32> to vector<8x32xf32>
    %25 = math.tanh %24 : vector<8x32xf32>
    %26 = vector.extract_strided_slice %23 {offsets = [0, 0], sizes = [8, 32], strides = [1, 1]} : vector<8x96xf32> to vector<8x32xf32>
    %27 = vector.extract_strided_slice %23 {offsets = [0, 32], sizes = [8, 32], strides = [1, 1]} : vector<8x96xf32> to vector<8x32xf32>
    %28 = vector.extract_strided_slice %23 {offsets = [0, 64], sizes = [8, 32], strides = [1, 1]} : vector<8x96xf32> to vector<8x32xf32>
    %29 = arith.mulf %27, %9 : vector<8x32xf32>
    %30 = arith.mulf %26, %25 : vector<8x32xf32>
    %31 = arith.addf %29, %30 : vector<8x32xf32>
    %32 = math.tanh %31 : vector<8x32xf32>
    %33 = arith.mulf %28, %32 : vector<8x32xf32>
    %34 = arith.truncf %33 : vector<8x32xf32> to vector<8x32xbf16>
    %cst_14 = arith.constant dense<0.000000e+00> : vector<8x128xf32>
    %35 = tpu.matmul %34, %8, %cst_14 {dimension_numbers = #tpu.dot_dimension_numbers<[1], [0], [0], [1], [0, 0, 1, 1], [], []>} : vector<8x32xbf16>, vector<32x128xbf16>, vector<8x128xf32> -> vector<8x128xf32>
    %36 = vector.extract_strided_slice %14 {offsets = [0, 128], sizes = [8, 128], strides = [1, 1]} : vector<8x256xf32> to vector<8x128xf32>
    %37 = arith.addf %35, %36 : vector<8x128xf32>
    %38 = vector.extract_strided_slice %37 {offsets = [0, 0], sizes = [8, 96], strides = [1, 1]} : vector<8x128xf32> to vector<8x96xf32>
    %39 = arith.negf %38 : vector<8x96xf32>
    %40 = math.exp %39 : vector<8x96xf32>
    %cst_15 = arith.constant 1.000000e+00 : f32
    %41 = vector.broadcast %cst_15 : f32 to vector<8x96xf32>
    %42 = arith.addf %41, %40 : vector<8x96xf32>
    %43 = arith.divf %41, %42 : vector<8x96xf32>
    %44 = vector.extract_strided_slice %37 {offsets = [0, 96], sizes = [8, 32], strides = [1, 1]} : vector<8x128xf32> to vector<8x32xf32>
    %45 = math.tanh %44 : vector<8x32xf32>
    %46 = vector.extract_strided_slice %43 {offsets = [0, 0], sizes = [8, 32], strides = [1, 1]} : vector<8x96xf32> to vector<8x32xf32>
    %47 = vector.extract_strided_slice %43 {offsets = [0, 32], sizes = [8, 32], strides = [1, 1]} : vector<8x96xf32> to vector<8x32xf32>
    %48 = vector.extract_strided_slice %43 {offsets = [0, 64], sizes = [8, 32], strides = [1, 1]} : vector<8x96xf32> to vector<8x32xf32>
    %49 = arith.mulf %47, %9 : vector<8x32xf32>
    %50 = arith.mulf %46, %45 : vector<8x32xf32>
    %51 = arith.addf %49, %50 : vector<8x32xf32>
    %52 = math.tanh %51 : vector<8x32xf32>
    %53 = arith.mulf %48, %52 : vector<8x32xf32>
    %54 = tpu.concatenate %33, %53 in 1 : vector<8x32xf32>, vector<8x32xf32> -> vector<8x64xf32>
    %55 = arith.truncf %54 : vector<8x64xf32> to vector<8x64xbf16>
    %cst_16 = arith.constant dense<0.000000e+00> : vector<8x256xf32>
    %56 = tpu.matmul %55, %6, %cst_16 {dimension_numbers = #tpu.dot_dimension_numbers<[1], [0], [0], [1], [0, 0, 1, 1], [], []>} : vector<8x64xbf16>, vector<64x256xbf16>, vector<8x256xf32> -> vector<8x256xf32>
    %57 = vector.broadcast %7 : vector<1x256xf32> to vector<8x256xf32>
    %58 = arith.addf %56, %57 : vector<8x256xf32>
    %59 = vector.extract_strided_slice %5 {offsets = [8, 0], sizes = [8, 128], strides = [1, 1]} : vector<64x128xf32> to vector<8x128xf32>
    %60 = vector.extract_strided_slice %58 {offsets = [0, 0], sizes = [8, 128], strides = [1, 1]} : vector<8x256xf32> to vector<8x128xf32>
    %61 = arith.addf %59, %60 : vector<8x128xf32>
    %62 = vector.extract_strided_slice %61 {offsets = [0, 0], sizes = [8, 96], strides = [1, 1]} : vector<8x128xf32> to vector<8x96xf32>
    %63 = arith.negf %62 : vector<8x96xf32>
    %64 = math.exp %63 : vector<8x96xf32>
    %cst_17 = arith.constant 1.000000e+00 : f32
    %65 = vector.broadcast %cst_17 : f32 to vector<8x96xf32>
    %66 = arith.addf %65, %64 : vector<8x96xf32>
    %67 = arith.divf %65, %66 : vector<8x96xf32>
    %68 = vector.extract_strided_slice %61 {offsets = [0, 96], sizes = [8, 32], strides = [1, 1]} : vector<8x128xf32> to vector<8x32xf32>
    %69 = math.tanh %68 : vector<8x32xf32>
    %70 = vector.extract_strided_slice %67 {offsets = [0, 0], sizes = [8, 32], strides = [1, 1]} : vector<8x96xf32> to vector<8x32xf32>
    %71 = vector.extract_strided_slice %67 {offsets = [0, 32], sizes = [8, 32], strides = [1, 1]} : vector<8x96xf32> to vector<8x32xf32>
    %72 = vector.extract_strided_slice %67 {offsets = [0, 64], sizes = [8, 32], strides = [1, 1]} : vector<8x96xf32> to vector<8x32xf32>
    %73 = arith.mulf %71, %31 : vector<8x32xf32>
    %74 = arith.mulf %70, %69 : vector<8x32xf32>
    %75 = arith.addf %73, %74 : vector<8x32xf32>
    %76 = math.tanh %75 : vector<8x32xf32>
    %77 = arith.mulf %72, %76 : vector<8x32xf32>
    %78 = arith.truncf %77 : vector<8x32xf32> to vector<8x32xbf16>
    %cst_18 = arith.constant dense<0.000000e+00> : vector<8x128xf32>
    %79 = tpu.matmul %78, %8, %cst_18 {dimension_numbers = #tpu.dot_dimension_numbers<[1], [0], [0], [1], [0, 0, 1, 1], [], []>} : vector<8x32xbf16>, vector<32x128xbf16>, vector<8x128xf32> -> vector<8x128xf32>
    %80 = vector.extract_strided_slice %58 {offsets = [0, 128], sizes = [8, 128], strides = [1, 1]} : vector<8x256xf32> to vector<8x128xf32>
    %81 = arith.addf %79, %80 : vector<8x128xf32>
    %82 = vector.extract_strided_slice %81 {offsets = [0, 0], sizes = [8, 96], strides = [1, 1]} : vector<8x128xf32> to vector<8x96xf32>
    %83 = arith.negf %82 : vector<8x96xf32>
    %84 = math.exp %83 : vector<8x96xf32>
    %cst_19 = arith.constant 1.000000e+00 : f32
    %85 = vector.broadcast %cst_19 : f32 to vector<8x96xf32>
    %86 = arith.addf %85, %84 : vector<8x96xf32>
    %87 = arith.divf %85, %86 : vector<8x96xf32>
    %88 = vector.extract_strided_slice %81 {offsets = [0, 96], sizes = [8, 32], strides = [1, 1]} : vector<8x128xf32> to vector<8x32xf32>
    %89 = math.tanh %88 : vector<8x32xf32>
    %90 = vector.extract_strided_slice %87 {offsets = [0, 0], sizes = [8, 32], strides = [1, 1]} : vector<8x96xf32> to vector<8x32xf32>
    %91 = vector.extract_strided_slice %87 {offsets = [0, 32], sizes = [8, 32], strides = [1, 1]} : vector<8x96xf32> to vector<8x32xf32>
    %92 = vector.extract_strided_slice %87 {offsets = [0, 64], sizes = [8, 32], strides = [1, 1]} : vector<8x96xf32> to vector<8x32xf32>
    %93 = arith.mulf %91, %51 : vector<8x32xf32>
    %94 = arith.mulf %90, %89 : vector<8x32xf32>
    %95 = arith.addf %93, %94 : vector<8x32xf32>
    %96 = math.tanh %95 : vector<8x32xf32>
    %97 = arith.mulf %92, %96 : vector<8x32xf32>
    %98 = tpu.concatenate %77, %97 in 1 : vector<8x32xf32>, vector<8x32xf32> -> vector<8x64xf32>
    %99 = arith.truncf %98 : vector<8x64xf32> to vector<8x64xbf16>
    %cst_20 = arith.constant dense<0.000000e+00> : vector<8x256xf32>
    %100 = tpu.matmul %99, %6, %cst_20 {dimension_numbers = #tpu.dot_dimension_numbers<[1], [0], [0], [1], [0, 0, 1, 1], [], []>} : vector<8x64xbf16>, vector<64x256xbf16>, vector<8x256xf32> -> vector<8x256xf32>
    %101 = vector.broadcast %7 : vector<1x256xf32> to vector<8x256xf32>
    %102 = arith.addf %100, %101 : vector<8x256xf32>
    %103 = vector.extract_strided_slice %5 {offsets = [16, 0], sizes = [8, 128], strides = [1, 1]} : vector<64x128xf32> to vector<8x128xf32>
    %104 = vector.extract_strided_slice %102 {offsets = [0, 0], sizes = [8, 128], strides = [1, 1]} : vector<8x256xf32> to vector<8x128xf32>
    %105 = arith.addf %103, %104 : vector<8x128xf32>
    %106 = vector.extract_strided_slice %105 {offsets = [0, 0], sizes = [8, 96], strides = [1, 1]} : vector<8x128xf32> to vector<8x96xf32>
    %107 = arith.negf %106 : vector<8x96xf32>
    %108 = math.exp %107 : vector<8x96xf32>
    %cst_21 = arith.constant 1.000000e+00 : f32
    %109 = vector.broadcast %cst_21 : f32 to vector<8x96xf32>
    %110 = arith.addf %109, %108 : vector<8x96xf32>
    %111 = arith.divf %109, %110 : vector<8x96xf32>
    %112 = vector.extract_strided_slice %105 {offsets = [0, 96], sizes = [8, 32], strides = [1, 1]} : vector<8x128xf32> to vector<8x32xf32>
    %113 = math.tanh %112 : vector<8x32xf32>
    %114 = vector.extract_strided_slice %111 {offsets = [0, 0], sizes = [8, 32], strides = [1, 1]} : vector<8x96xf32> to vector<8x32xf32>
    %115 = vector.extract_strided_slice %111 {offsets = [0, 32], sizes = [8, 32], strides = [1, 1]} : vector<8x96xf32> to vector<8x32xf32>
    %116 = vector.extract_strided_slice %111 {offsets = [0, 64], sizes = [8, 32], strides = [1, 1]} : vector<8x96xf32> to vector<8x32xf32>
    %117 = arith.mulf %115, %75 : vector<8x32xf32>
    %118 = arith.mulf %114, %113 : vector<8x32xf32>
    %119 = arith.addf %117, %118 : vector<8x32xf32>
    %120 = math.tanh %119 : vector<8x32xf32>
    %121 = arith.mulf %116, %120 : vector<8x32xf32>
    %122 = arith.truncf %121 : vector<8x32xf32> to vector<8x32xbf16>
    %cst_22 = arith.constant dense<0.000000e+00> : vector<8x128xf32>
    %123 = tpu.matmul %122, %8, %cst_22 {dimension_numbers = #tpu.dot_dimension_numbers<[1], [0], [0], [1], [0, 0, 1, 1], [], []>} : vector<8x32xbf16>, vector<32x128xbf16>, vector<8x128xf32> -> vector<8x128xf32>
    %124 = vector.extract_strided_slice %102 {offsets = [0, 128], sizes = [8, 128], strides = [1, 1]} : vector<8x256xf32> to vector<8x128xf32>
    %125 = arith.addf %123, %124 : vector<8x128xf32>
    %126 = vector.extract_strided_slice %125 {offsets = [0, 0], sizes = [8, 96], strides = [1, 1]} : vector<8x128xf32> to vector<8x96xf32>
    %127 = arith.negf %126 : vector<8x96xf32>
    %128 = math.exp %127 : vector<8x96xf32>
    %cst_23 = arith.constant 1.000000e+00 : f32
    %129 = vector.broadcast %cst_23 : f32 to vector<8x96xf32>
    %130 = arith.addf %129, %128 : vector<8x96xf32>
    %131 = arith.divf %129, %130 : vector<8x96xf32>
    %132 = vector.extract_strided_slice %125 {offsets = [0, 96], sizes = [8, 32], strides = [1, 1]} : vector<8x128xf32> to vector<8x32xf32>
    %133 = math.tanh %132 : vector<8x32xf32>
    %134 = vector.extract_strided_slice %131 {offsets = [0, 0], sizes = [8, 32], strides = [1, 1]} : vector<8x96xf32> to vector<8x32xf32>
    %135 = vector.extract_strided_slice %131 {offsets = [0, 32], sizes = [8, 32], strides = [1, 1]} : vector<8x96xf32> to vector<8x32xf32>
    %136 = vector.extract_strided_slice %131 {offsets = [0, 64], sizes = [8, 32], strides = [1, 1]} : vector<8x96xf32> to vector<8x32xf32>
    %137 = arith.mulf %135, %95 : vector<8x32xf32>
    %138 = arith.mulf %134, %133 : vector<8x32xf32>
    %139 = arith.addf %137, %138 : vector<8x32xf32>
    %140 = math.tanh %139 : vector<8x32xf32>
    %141 = arith.mulf %136, %140 : vector<8x32xf32>
    %142 = tpu.concatenate %121, %141 in 1 : vector<8x32xf32>, vector<8x32xf32> -> vector<8x64xf32>
    %143 = arith.truncf %142 : vector<8x64xf32> to vector<8x64xbf16>
    %cst_24 = arith.constant dense<0.000000e+00> : vector<8x256xf32>
    %144 = tpu.matmul %143, %6, %cst_24 {dimension_numbers = #tpu.dot_dimension_numbers<[1], [0], [0], [1], [0, 0, 1, 1], [], []>} : vector<8x64xbf16>, vector<64x256xbf16>, vector<8x256xf32> -> vector<8x256xf32>
    %145 = vector.broadcast %7 : vector<1x256xf32> to vector<8x256xf32>
    %146 = arith.addf %144, %145 : vector<8x256xf32>
    %147 = vector.extract_strided_slice %5 {offsets = [24, 0], sizes = [8, 128], strides = [1, 1]} : vector<64x128xf32> to vector<8x128xf32>
    %148 = vector.extract_strided_slice %146 {offsets = [0, 0], sizes = [8, 128], strides = [1, 1]} : vector<8x256xf32> to vector<8x128xf32>
    %149 = arith.addf %147, %148 : vector<8x128xf32>
    %150 = vector.extract_strided_slice %149 {offsets = [0, 0], sizes = [8, 96], strides = [1, 1]} : vector<8x128xf32> to vector<8x96xf32>
    %151 = arith.negf %150 : vector<8x96xf32>
    %152 = math.exp %151 : vector<8x96xf32>
    %cst_25 = arith.constant 1.000000e+00 : f32
    %153 = vector.broadcast %cst_25 : f32 to vector<8x96xf32>
    %154 = arith.addf %153, %152 : vector<8x96xf32>
    %155 = arith.divf %153, %154 : vector<8x96xf32>
    %156 = vector.extract_strided_slice %149 {offsets = [0, 96], sizes = [8, 32], strides = [1, 1]} : vector<8x128xf32> to vector<8x32xf32>
    %157 = math.tanh %156 : vector<8x32xf32>
    %158 = vector.extract_strided_slice %155 {offsets = [0, 0], sizes = [8, 32], strides = [1, 1]} : vector<8x96xf32> to vector<8x32xf32>
    %159 = vector.extract_strided_slice %155 {offsets = [0, 32], sizes = [8, 32], strides = [1, 1]} : vector<8x96xf32> to vector<8x32xf32>
    %160 = vector.extract_strided_slice %155 {offsets = [0, 64], sizes = [8, 32], strides = [1, 1]} : vector<8x96xf32> to vector<8x32xf32>
    %161 = arith.mulf %159, %119 : vector<8x32xf32>
    %162 = arith.mulf %158, %157 : vector<8x32xf32>
    %163 = arith.addf %161, %162 : vector<8x32xf32>
    %164 = math.tanh %163 : vector<8x32xf32>
    %165 = arith.mulf %160, %164 : vector<8x32xf32>
    %166 = arith.truncf %165 : vector<8x32xf32> to vector<8x32xbf16>
    %cst_26 = arith.constant dense<0.000000e+00> : vector<8x128xf32>
    %167 = tpu.matmul %166, %8, %cst_26 {dimension_numbers = #tpu.dot_dimension_numbers<[1], [0], [0], [1], [0, 0, 1, 1], [], []>} : vector<8x32xbf16>, vector<32x128xbf16>, vector<8x128xf32> -> vector<8x128xf32>
    %168 = vector.extract_strided_slice %146 {offsets = [0, 128], sizes = [8, 128], strides = [1, 1]} : vector<8x256xf32> to vector<8x128xf32>
    %169 = arith.addf %167, %168 : vector<8x128xf32>
    %170 = vector.extract_strided_slice %169 {offsets = [0, 0], sizes = [8, 96], strides = [1, 1]} : vector<8x128xf32> to vector<8x96xf32>
    %171 = arith.negf %170 : vector<8x96xf32>
    %172 = math.exp %171 : vector<8x96xf32>
    %cst_27 = arith.constant 1.000000e+00 : f32
    %173 = vector.broadcast %cst_27 : f32 to vector<8x96xf32>
    %174 = arith.addf %173, %172 : vector<8x96xf32>
    %175 = arith.divf %173, %174 : vector<8x96xf32>
    %176 = vector.extract_strided_slice %169 {offsets = [0, 96], sizes = [8, 32], strides = [1, 1]} : vector<8x128xf32> to vector<8x32xf32>
    %177 = math.tanh %176 : vector<8x32xf32>
    %178 = vector.extract_strided_slice %175 {offsets = [0, 0], sizes = [8, 32], strides = [1, 1]} : vector<8x96xf32> to vector<8x32xf32>
    %179 = vector.extract_strided_slice %175 {offsets = [0, 32], sizes = [8, 32], strides = [1, 1]} : vector<8x96xf32> to vector<8x32xf32>
    %180 = vector.extract_strided_slice %175 {offsets = [0, 64], sizes = [8, 32], strides = [1, 1]} : vector<8x96xf32> to vector<8x32xf32>
    %181 = arith.mulf %179, %139 : vector<8x32xf32>
    %182 = arith.mulf %178, %177 : vector<8x32xf32>
    %183 = arith.addf %181, %182 : vector<8x32xf32>
    %184 = math.tanh %183 : vector<8x32xf32>
    %185 = arith.mulf %180, %184 : vector<8x32xf32>
    %186 = tpu.concatenate %165, %185 in 1 : vector<8x32xf32>, vector<8x32xf32> -> vector<8x64xf32>
    %187 = arith.truncf %186 : vector<8x64xf32> to vector<8x64xbf16>
    %cst_28 = arith.constant dense<0.000000e+00> : vector<8x256xf32>
    %188 = tpu.matmul %187, %6, %cst_28 {dimension_numbers = #tpu.dot_dimension_numbers<[1], [0], [0], [1], [0, 0, 1, 1], [], []>} : vector<8x64xbf16>, vector<64x256xbf16>, vector<8x256xf32> -> vector<8x256xf32>
    %189 = vector.broadcast %7 : vector<1x256xf32> to vector<8x256xf32>
    %190 = arith.addf %188, %189 : vector<8x256xf32>
    %191 = vector.extract_strided_slice %5 {offsets = [32, 0], sizes = [8, 128], strides = [1, 1]} : vector<64x128xf32> to vector<8x128xf32>
    %192 = vector.extract_strided_slice %190 {offsets = [0, 0], sizes = [8, 128], strides = [1, 1]} : vector<8x256xf32> to vector<8x128xf32>
    %193 = arith.addf %191, %192 : vector<8x128xf32>
    %194 = vector.extract_strided_slice %193 {offsets = [0, 0], sizes = [8, 96], strides = [1, 1]} : vector<8x128xf32> to vector<8x96xf32>
    %195 = arith.negf %194 : vector<8x96xf32>
    %196 = math.exp %195 : vector<8x96xf32>
    %cst_29 = arith.constant 1.000000e+00 : f32
    %197 = vector.broadcast %cst_29 : f32 to vector<8x96xf32>
    %198 = arith.addf %197, %196 : vector<8x96xf32>
    %199 = arith.divf %197, %198 : vector<8x96xf32>
    %200 = vector.extract_strided_slice %193 {offsets = [0, 96], sizes = [8, 32], strides = [1, 1]} : vector<8x128xf32> to vector<8x32xf32>
    %201 = math.tanh %200 : vector<8x32xf32>
    %202 = vector.extract_strided_slice %199 {offsets = [0, 0], sizes = [8, 32], strides = [1, 1]} : vector<8x96xf32> to vector<8x32xf32>
    %203 = vector.extract_strided_slice %199 {offsets = [0, 32], sizes = [8, 32], strides = [1, 1]} : vector<8x96xf32> to vector<8x32xf32>
    %204 = vector.extract_strided_slice %199 {offsets = [0, 64], sizes = [8, 32], strides = [1, 1]} : vector<8x96xf32> to vector<8x32xf32>
    %205 = arith.mulf %203, %163 : vector<8x32xf32>
    %206 = arith.mulf %202, %201 : vector<8x32xf32>
    %207 = arith.addf %205, %206 : vector<8x32xf32>
    %208 = math.tanh %207 : vector<8x32xf32>
    %209 = arith.mulf %204, %208 : vector<8x32xf32>
    %210 = arith.truncf %209 : vector<8x32xf32> to vector<8x32xbf16>
    %cst_30 = arith.constant dense<0.000000e+00> : vector<8x128xf32>
    %211 = tpu.matmul %210, %8, %cst_30 {dimension_numbers = #tpu.dot_dimension_numbers<[1], [0], [0], [1], [0, 0, 1, 1], [], []>} : vector<8x32xbf16>, vector<32x128xbf16>, vector<8x128xf32> -> vector<8x128xf32>
    %212 = vector.extract_strided_slice %190 {offsets = [0, 128], sizes = [8, 128], strides = [1, 1]} : vector<8x256xf32> to vector<8x128xf32>
    %213 = arith.addf %211, %212 : vector<8x128xf32>
    %214 = vector.extract_strided_slice %213 {offsets = [0, 0], sizes = [8, 96], strides = [1, 1]} : vector<8x128xf32> to vector<8x96xf32>
    %215 = arith.negf %214 : vector<8x96xf32>
    %216 = math.exp %215 : vector<8x96xf32>
    %cst_31 = arith.constant 1.000000e+00 : f32
    %217 = vector.broadcast %cst_31 : f32 to vector<8x96xf32>
    %218 = arith.addf %217, %216 : vector<8x96xf32>
    %219 = arith.divf %217, %218 : vector<8x96xf32>
    %220 = vector.extract_strided_slice %213 {offsets = [0, 96], sizes = [8, 32], strides = [1, 1]} : vector<8x128xf32> to vector<8x32xf32>
    %221 = math.tanh %220 : vector<8x32xf32>
    %222 = vector.extract_strided_slice %219 {offsets = [0, 0], sizes = [8, 32], strides = [1, 1]} : vector<8x96xf32> to vector<8x32xf32>
    %223 = vector.extract_strided_slice %219 {offsets = [0, 32], sizes = [8, 32], strides = [1, 1]} : vector<8x96xf32> to vector<8x32xf32>
    %224 = vector.extract_strided_slice %219 {offsets = [0, 64], sizes = [8, 32], strides = [1, 1]} : vector<8x96xf32> to vector<8x32xf32>
    %225 = arith.mulf %223, %183 : vector<8x32xf32>
    %226 = arith.mulf %222, %221 : vector<8x32xf32>
    %227 = arith.addf %225, %226 : vector<8x32xf32>
    %228 = math.tanh %227 : vector<8x32xf32>
    %229 = arith.mulf %224, %228 : vector<8x32xf32>
    %230 = tpu.concatenate %209, %229 in 1 : vector<8x32xf32>, vector<8x32xf32> -> vector<8x64xf32>
    %231 = arith.truncf %230 : vector<8x64xf32> to vector<8x64xbf16>
    %cst_32 = arith.constant dense<0.000000e+00> : vector<8x256xf32>
    %232 = tpu.matmul %231, %6, %cst_32 {dimension_numbers = #tpu.dot_dimension_numbers<[1], [0], [0], [1], [0, 0, 1, 1], [], []>} : vector<8x64xbf16>, vector<64x256xbf16>, vector<8x256xf32> -> vector<8x256xf32>
    %233 = vector.broadcast %7 : vector<1x256xf32> to vector<8x256xf32>
    %234 = arith.addf %232, %233 : vector<8x256xf32>
    %235 = vector.extract_strided_slice %5 {offsets = [40, 0], sizes = [8, 128], strides = [1, 1]} : vector<64x128xf32> to vector<8x128xf32>
    %236 = vector.extract_strided_slice %234 {offsets = [0, 0], sizes = [8, 128], strides = [1, 1]} : vector<8x256xf32> to vector<8x128xf32>
    %237 = arith.addf %235, %236 : vector<8x128xf32>
    %238 = vector.extract_strided_slice %237 {offsets = [0, 0], sizes = [8, 96], strides = [1, 1]} : vector<8x128xf32> to vector<8x96xf32>
    %239 = arith.negf %238 : vector<8x96xf32>
    %240 = math.exp %239 : vector<8x96xf32>
    %cst_33 = arith.constant 1.000000e+00 : f32
    %241 = vector.broadcast %cst_33 : f32 to vector<8x96xf32>
    %242 = arith.addf %241, %240 : vector<8x96xf32>
    %243 = arith.divf %241, %242 : vector<8x96xf32>
    %244 = vector.extract_strided_slice %237 {offsets = [0, 96], sizes = [8, 32], strides = [1, 1]} : vector<8x128xf32> to vector<8x32xf32>
    %245 = math.tanh %244 : vector<8x32xf32>
    %246 = vector.extract_strided_slice %243 {offsets = [0, 0], sizes = [8, 32], strides = [1, 1]} : vector<8x96xf32> to vector<8x32xf32>
    %247 = vector.extract_strided_slice %243 {offsets = [0, 32], sizes = [8, 32], strides = [1, 1]} : vector<8x96xf32> to vector<8x32xf32>
    %248 = vector.extract_strided_slice %243 {offsets = [0, 64], sizes = [8, 32], strides = [1, 1]} : vector<8x96xf32> to vector<8x32xf32>
    %249 = arith.mulf %247, %207 : vector<8x32xf32>
    %250 = arith.mulf %246, %245 : vector<8x32xf32>
    %251 = arith.addf %249, %250 : vector<8x32xf32>
    %252 = math.tanh %251 : vector<8x32xf32>
    %253 = arith.mulf %248, %252 : vector<8x32xf32>
    %254 = arith.truncf %253 : vector<8x32xf32> to vector<8x32xbf16>
    %cst_34 = arith.constant dense<0.000000e+00> : vector<8x128xf32>
    %255 = tpu.matmul %254, %8, %cst_34 {dimension_numbers = #tpu.dot_dimension_numbers<[1], [0], [0], [1], [0, 0, 1, 1], [], []>} : vector<8x32xbf16>, vector<32x128xbf16>, vector<8x128xf32> -> vector<8x128xf32>
    %256 = vector.extract_strided_slice %234 {offsets = [0, 128], sizes = [8, 128], strides = [1, 1]} : vector<8x256xf32> to vector<8x128xf32>
    %257 = arith.addf %255, %256 : vector<8x128xf32>
    %258 = vector.extract_strided_slice %257 {offsets = [0, 0], sizes = [8, 96], strides = [1, 1]} : vector<8x128xf32> to vector<8x96xf32>
    %259 = arith.negf %258 : vector<8x96xf32>
    %260 = math.exp %259 : vector<8x96xf32>
    %cst_35 = arith.constant 1.000000e+00 : f32
    %261 = vector.broadcast %cst_35 : f32 to vector<8x96xf32>
    %262 = arith.addf %261, %260 : vector<8x96xf32>
    %263 = arith.divf %261, %262 : vector<8x96xf32>
    %264 = vector.extract_strided_slice %257 {offsets = [0, 96], sizes = [8, 32], strides = [1, 1]} : vector<8x128xf32> to vector<8x32xf32>
    %265 = math.tanh %264 : vector<8x32xf32>
    %266 = vector.extract_strided_slice %263 {offsets = [0, 0], sizes = [8, 32], strides = [1, 1]} : vector<8x96xf32> to vector<8x32xf32>
    %267 = vector.extract_strided_slice %263 {offsets = [0, 32], sizes = [8, 32], strides = [1, 1]} : vector<8x96xf32> to vector<8x32xf32>
    %268 = vector.extract_strided_slice %263 {offsets = [0, 64], sizes = [8, 32], strides = [1, 1]} : vector<8x96xf32> to vector<8x32xf32>
    %269 = arith.mulf %267, %227 : vector<8x32xf32>
    %270 = arith.mulf %266, %265 : vector<8x32xf32>
    %271 = arith.addf %269, %270 : vector<8x32xf32>
    %272 = math.tanh %271 : vector<8x32xf32>
    %273 = arith.mulf %268, %272 : vector<8x32xf32>
    %274 = tpu.concatenate %253, %273 in 1 : vector<8x32xf32>, vector<8x32xf32> -> vector<8x64xf32>
    %275 = arith.truncf %274 : vector<8x64xf32> to vector<8x64xbf16>
    %cst_36 = arith.constant dense<0.000000e+00> : vector<8x256xf32>
    %276 = tpu.matmul %275, %6, %cst_36 {dimension_numbers = #tpu.dot_dimension_numbers<[1], [0], [0], [1], [0, 0, 1, 1], [], []>} : vector<8x64xbf16>, vector<64x256xbf16>, vector<8x256xf32> -> vector<8x256xf32>
    %277 = vector.broadcast %7 : vector<1x256xf32> to vector<8x256xf32>
    %278 = arith.addf %276, %277 : vector<8x256xf32>
    %279 = vector.extract_strided_slice %5 {offsets = [48, 0], sizes = [8, 128], strides = [1, 1]} : vector<64x128xf32> to vector<8x128xf32>
    %280 = vector.extract_strided_slice %278 {offsets = [0, 0], sizes = [8, 128], strides = [1, 1]} : vector<8x256xf32> to vector<8x128xf32>
    %281 = arith.addf %279, %280 : vector<8x128xf32>
    %282 = vector.extract_strided_slice %281 {offsets = [0, 0], sizes = [8, 96], strides = [1, 1]} : vector<8x128xf32> to vector<8x96xf32>
    %283 = arith.negf %282 : vector<8x96xf32>
    %284 = math.exp %283 : vector<8x96xf32>
    %cst_37 = arith.constant 1.000000e+00 : f32
    %285 = vector.broadcast %cst_37 : f32 to vector<8x96xf32>
    %286 = arith.addf %285, %284 : vector<8x96xf32>
    %287 = arith.divf %285, %286 : vector<8x96xf32>
    %288 = vector.extract_strided_slice %281 {offsets = [0, 96], sizes = [8, 32], strides = [1, 1]} : vector<8x128xf32> to vector<8x32xf32>
    %289 = math.tanh %288 : vector<8x32xf32>
    %290 = vector.extract_strided_slice %287 {offsets = [0, 0], sizes = [8, 32], strides = [1, 1]} : vector<8x96xf32> to vector<8x32xf32>
    %291 = vector.extract_strided_slice %287 {offsets = [0, 32], sizes = [8, 32], strides = [1, 1]} : vector<8x96xf32> to vector<8x32xf32>
    %292 = vector.extract_strided_slice %287 {offsets = [0, 64], sizes = [8, 32], strides = [1, 1]} : vector<8x96xf32> to vector<8x32xf32>
    %293 = arith.mulf %291, %251 : vector<8x32xf32>
    %294 = arith.mulf %290, %289 : vector<8x32xf32>
    %295 = arith.addf %293, %294 : vector<8x32xf32>
    %296 = math.tanh %295 : vector<8x32xf32>
    %297 = arith.mulf %292, %296 : vector<8x32xf32>
    %298 = arith.truncf %297 : vector<8x32xf32> to vector<8x32xbf16>
    %cst_38 = arith.constant dense<0.000000e+00> : vector<8x128xf32>
    %299 = tpu.matmul %298, %8, %cst_38 {dimension_numbers = #tpu.dot_dimension_numbers<[1], [0], [0], [1], [0, 0, 1, 1], [], []>} : vector<8x32xbf16>, vector<32x128xbf16>, vector<8x128xf32> -> vector<8x128xf32>
    %300 = vector.extract_strided_slice %278 {offsets = [0, 128], sizes = [8, 128], strides = [1, 1]} : vector<8x256xf32> to vector<8x128xf32>
    %301 = arith.addf %299, %300 : vector<8x128xf32>
    %302 = vector.extract_strided_slice %301 {offsets = [0, 0], sizes = [8, 96], strides = [1, 1]} : vector<8x128xf32> to vector<8x96xf32>
    %303 = arith.negf %302 : vector<8x96xf32>
    %304 = math.exp %303 : vector<8x96xf32>
    %cst_39 = arith.constant 1.000000e+00 : f32
    %305 = vector.broadcast %cst_39 : f32 to vector<8x96xf32>
    %306 = arith.addf %305, %304 : vector<8x96xf32>
    %307 = arith.divf %305, %306 : vector<8x96xf32>
    %308 = vector.extract_strided_slice %301 {offsets = [0, 96], sizes = [8, 32], strides = [1, 1]} : vector<8x128xf32> to vector<8x32xf32>
    %309 = math.tanh %308 : vector<8x32xf32>
    %310 = vector.extract_strided_slice %307 {offsets = [0, 0], sizes = [8, 32], strides = [1, 1]} : vector<8x96xf32> to vector<8x32xf32>
    %311 = vector.extract_strided_slice %307 {offsets = [0, 32], sizes = [8, 32], strides = [1, 1]} : vector<8x96xf32> to vector<8x32xf32>
    %312 = vector.extract_strided_slice %307 {offsets = [0, 64], sizes = [8, 32], strides = [1, 1]} : vector<8x96xf32> to vector<8x32xf32>
    %313 = arith.mulf %311, %271 : vector<8x32xf32>
    %314 = arith.mulf %310, %309 : vector<8x32xf32>
    %315 = arith.addf %313, %314 : vector<8x32xf32>
    %316 = math.tanh %315 : vector<8x32xf32>
    %317 = arith.mulf %312, %316 : vector<8x32xf32>
    %318 = tpu.concatenate %297, %317 in 1 : vector<8x32xf32>, vector<8x32xf32> -> vector<8x64xf32>
    %319 = arith.truncf %318 : vector<8x64xf32> to vector<8x64xbf16>
    %cst_40 = arith.constant dense<0.000000e+00> : vector<8x256xf32>
    %320 = tpu.matmul %319, %6, %cst_40 {dimension_numbers = #tpu.dot_dimension_numbers<[1], [0], [0], [1], [0, 0, 1, 1], [], []>} : vector<8x64xbf16>, vector<64x256xbf16>, vector<8x256xf32> -> vector<8x256xf32>
    %321 = vector.broadcast %7 : vector<1x256xf32> to vector<8x256xf32>
    %322 = arith.addf %320, %321 : vector<8x256xf32>
    %323 = vector.extract_strided_slice %5 {offsets = [56, 0], sizes = [8, 128], strides = [1, 1]} : vector<64x128xf32> to vector<8x128xf32>
    %324 = vector.extract_strided_slice %322 {offsets = [0, 0], sizes = [8, 128], strides = [1, 1]} : vector<8x256xf32> to vector<8x128xf32>
    %325 = arith.addf %323, %324 : vector<8x128xf32>
    %326 = vector.extract_strided_slice %325 {offsets = [0, 0], sizes = [8, 96], strides = [1, 1]} : vector<8x128xf32> to vector<8x96xf32>
    %327 = arith.negf %326 : vector<8x96xf32>
    %328 = math.exp %327 : vector<8x96xf32>
    %cst_41 = arith.constant 1.000000e+00 : f32
    %329 = vector.broadcast %cst_41 : f32 to vector<8x96xf32>
    %330 = arith.addf %329, %328 : vector<8x96xf32>
    %331 = arith.divf %329, %330 : vector<8x96xf32>
    %332 = vector.extract_strided_slice %325 {offsets = [0, 96], sizes = [8, 32], strides = [1, 1]} : vector<8x128xf32> to vector<8x32xf32>
    %333 = math.tanh %332 : vector<8x32xf32>
    %334 = vector.extract_strided_slice %331 {offsets = [0, 0], sizes = [8, 32], strides = [1, 1]} : vector<8x96xf32> to vector<8x32xf32>
    %335 = vector.extract_strided_slice %331 {offsets = [0, 32], sizes = [8, 32], strides = [1, 1]} : vector<8x96xf32> to vector<8x32xf32>
    %336 = vector.extract_strided_slice %331 {offsets = [0, 64], sizes = [8, 32], strides = [1, 1]} : vector<8x96xf32> to vector<8x32xf32>
    %337 = arith.mulf %335, %295 : vector<8x32xf32>
    %338 = arith.mulf %334, %333 : vector<8x32xf32>
    %339 = arith.addf %337, %338 : vector<8x32xf32>
    %340 = math.tanh %339 : vector<8x32xf32>
    %341 = arith.mulf %336, %340 : vector<8x32xf32>
    %342 = arith.truncf %341 : vector<8x32xf32> to vector<8x32xbf16>
    %cst_42 = arith.constant dense<0.000000e+00> : vector<8x128xf32>
    %343 = tpu.matmul %342, %8, %cst_42 {dimension_numbers = #tpu.dot_dimension_numbers<[1], [0], [0], [1], [0, 0, 1, 1], [], []>} : vector<8x32xbf16>, vector<32x128xbf16>, vector<8x128xf32> -> vector<8x128xf32>
    %344 = vector.extract_strided_slice %322 {offsets = [0, 128], sizes = [8, 128], strides = [1, 1]} : vector<8x256xf32> to vector<8x128xf32>
    %345 = arith.addf %343, %344 : vector<8x128xf32>
    %346 = vector.extract_strided_slice %345 {offsets = [0, 0], sizes = [8, 96], strides = [1, 1]} : vector<8x128xf32> to vector<8x96xf32>
    %347 = arith.negf %346 : vector<8x96xf32>
    %348 = math.exp %347 : vector<8x96xf32>
    %cst_43 = arith.constant 1.000000e+00 : f32
    %349 = vector.broadcast %cst_43 : f32 to vector<8x96xf32>
    %350 = arith.addf %349, %348 : vector<8x96xf32>
    %351 = arith.divf %349, %350 : vector<8x96xf32>
    %352 = vector.extract_strided_slice %345 {offsets = [0, 96], sizes = [8, 32], strides = [1, 1]} : vector<8x128xf32> to vector<8x32xf32>
    %353 = math.tanh %352 : vector<8x32xf32>
    %354 = vector.extract_strided_slice %351 {offsets = [0, 0], sizes = [8, 32], strides = [1, 1]} : vector<8x96xf32> to vector<8x32xf32>
    %355 = vector.extract_strided_slice %351 {offsets = [0, 32], sizes = [8, 32], strides = [1, 1]} : vector<8x96xf32> to vector<8x32xf32>
    %356 = vector.extract_strided_slice %351 {offsets = [0, 64], sizes = [8, 32], strides = [1, 1]} : vector<8x96xf32> to vector<8x32xf32>
    %357 = arith.mulf %355, %315 : vector<8x32xf32>
    %358 = arith.mulf %354, %353 : vector<8x32xf32>
    %359 = arith.addf %357, %358 : vector<8x32xf32>
    %360 = math.tanh %359 : vector<8x32xf32>
    %361 = arith.mulf %356, %360 : vector<8x32xf32>
    %362 = arith.truncf %361 : vector<8x32xf32> to vector<8x32xbf16>
    %c0_44 = arith.constant 0 : index
    %c0_45 = arith.constant 0 : index
    %363 = vector.load %arg7[%c0_44, %c0_45] : memref<32x128xbf16, #tpu.memory_space<vmem>>, vector<32x128xbf16>
    %cst_46 = arith.constant dense<0.000000e+00> : vector<8x128xf32>
    %364 = tpu.matmul %362, %363, %cst_46 {dimension_numbers = #tpu.dot_dimension_numbers<[1], [0], [0], [1], [0, 0, 1, 1], [], []>} : vector<8x32xbf16>, vector<32x128xbf16>, vector<8x128xf32> -> vector<8x128xf32>
    %c0_47 = arith.constant 0 : index
    %c0_48 = arith.constant 0 : index
    %365 = vector.load %arg8[%c0_47, %c0_48] : memref<1x128xf32, #tpu.memory_space<vmem>>, vector<1x128xf32>
    %366 = vector.broadcast %365 : vector<1x128xf32> to vector<8x128xf32>
    %367 = arith.addf %364, %366 : vector<8x128xf32>
    %cst_49 = arith.constant 0.000000e+00 : f32
    %368 = vector.broadcast %cst_49 : f32 to vector<8x128xf32>
    %369 = arith.maximumf %367, %368 : vector<8x128xf32>
    %370 = arith.truncf %369 : vector<8x128xf32> to vector<8x128xbf16>
    %c0_50 = arith.constant 0 : index
    %c0_51 = arith.constant 0 : index
    %371 = vector.load %arg9[%c0_50, %c0_51] : memref<128x128xbf16, #tpu.memory_space<vmem>>, vector<128x128xbf16>
    %cst_52 = arith.constant dense<0.000000e+00> : vector<8x128xf32>
    %372 = tpu.matmul %370, %371, %cst_52 {dimension_numbers = #tpu.dot_dimension_numbers<[1], [0], [0], [1], [0, 0, 1, 1], [], []>} : vector<8x128xbf16>, vector<128x128xbf16>, vector<8x128xf32> -> vector<8x128xf32>
    %c0_53 = arith.constant 0 : index
    %c0_54 = arith.constant 0 : index
    %373 = vector.load %arg10[%c0_53, %c0_54] : memref<1x128xf32, #tpu.memory_space<vmem>>, vector<1x128xf32>
    %374 = vector.broadcast %373 : vector<1x128xf32> to vector<8x128xf32>
    %375 = arith.addf %372, %374 : vector<8x128xf32>
    %cst_55 = arith.constant 0.000000e+00 : f32
    %376 = vector.broadcast %cst_55 : f32 to vector<8x128xf32>
    %377 = arith.maximumf %375, %376 : vector<8x128xf32>
    %378 = arith.truncf %377 : vector<8x128xf32> to vector<8x128xbf16>
    %c0_56 = arith.constant 0 : index
    %c0_57 = arith.constant 0 : index
    %379 = vector.load %arg11[%c0_56, %c0_57] : memref<128x128xbf16, #tpu.memory_space<vmem>>, vector<128x128xbf16>
    %cst_58 = arith.constant dense<0.000000e+00> : vector<8x128xf32>
    %380 = tpu.matmul %378, %379, %cst_58 {dimension_numbers = #tpu.dot_dimension_numbers<[1], [0], [0], [1], [0, 0, 1, 1], [], []>} : vector<8x128xbf16>, vector<128x128xbf16>, vector<8x128xf32> -> vector<8x128xf32>
    %c0_59 = arith.constant 0 : index
    %c0_60 = arith.constant 0 : index
    %381 = vector.load %arg12[%c0_59, %c0_60] : memref<1x128xf32, #tpu.memory_space<vmem>>, vector<1x128xf32>
    %382 = vector.broadcast %381 : vector<1x128xf32> to vector<8x128xf32>
    %383 = arith.addf %380, %382 : vector<8x128xf32>
    %384 = arith.negf %383 : vector<8x128xf32>
    %385 = math.exp %384 : vector<8x128xf32>
    %cst_61 = arith.constant 1.000000e+00 : f32
    %386 = vector.broadcast %cst_61 : f32 to vector<8x128xf32>
    %387 = arith.addf %386, %385 : vector<8x128xf32>
    %388 = arith.divf %386, %387 : vector<8x128xf32>
    %389 = tpu.iota {dimensions = array<i32: 0>} : vector<8x128xi32>
    %390 = tpu.iota {dimensions = array<i32: 1>} : vector<8x128xi32>
    %c2_i32 = arith.constant 2 : i32
    %391 = vector.broadcast %c2_i32 : i32 to vector<8x128xi32>
    %392 = arith.cmpi slt, %389, %391 : vector<8x128xi32>
    %c0_i32 = arith.constant 0 : i32
    %393 = vector.broadcast %c0_i32 : i32 to vector<8x128xi32>
    %394 = arith.cmpi eq, %390, %393 : vector<8x128xi32>
    %395 = arith.andi %392, %394 : vector<8x128xi1>
    %c0_62 = arith.constant 0 : index
    %c0_63 = arith.constant 0 : index
    %396 = vector.load %arg1[%c0_62, %c0_63] : memref<8x1xf32, #tpu.memory_space<vmem>>, vector<8x1xf32>
    %397 = vector.broadcast %396 : vector<8x1xf32> to vector<8x128xf32>
    %398 = arith.subf %388, %397 : vector<8x128xf32>
    %cst_64 = arith.constant 0.000000e+00 : f32
    %399 = vector.broadcast %cst_64 : f32 to vector<8x128xf32>
    %400 = arith.select %395, %398, %399 : vector<8x128xi1>, vector<8x128xf32>
    %401 = arith.mulf %400, %400 : vector<8x128xf32>
    %402 = vector.shape_cast %401 : vector<8x128xf32> to vector<1x8x128xf32>
    %cst_65 = arith.constant dense<0.000000e+00> : vector<1xf32>
    %403 = vector.multi_reduction <add>, %402, %cst_65 [1, 2] : vector<1x8x128xf32> to vector<1xf32>
    %404 = vector.shape_cast %403 : vector<1xf32> to vector<1x1x1xf32>
    %405 = vector.extract %404[0, 0, 0] : f32 from vector<1x1x1xf32>
    %cst_66 = arith.constant 5.000000e-01 : f32
    %406 = arith.mulf %405, %cst_66 : f32
    %c0_i32_67 = arith.constant 0 : i32
    %407 = vector.broadcast %c0_i32_67 : i32 to vector<8x128xi32>
    %408 = arith.cmpi eq, %389, %407 : vector<8x128xi32>
    %c1_i32 = arith.constant 1 : i32
    %409 = vector.broadcast %c1_i32 : i32 to vector<8x128xi32>
    %410 = arith.cmpi eq, %390, %409 : vector<8x128xi32>
    %411 = arith.andi %408, %410 : vector<8x128xi1>
    %412 = vector.broadcast %406 : f32 to vector<8x128xf32>
    %413 = arith.select %411, %412, %388 : vector<8x128xi1>, vector<8x128xf32>
    %c0_68 = arith.constant 0 : index
    %c0_69 = arith.constant 0 : index
    %414 = vector.load %arg13[%c0_68, %c0_69] : memref<8x128xf32, #tpu.memory_space<vmem>>, vector<8x128xf32>
    tpu.vector_store %arg13[%c0_68, %c0_69], %413 {strides = array<i32>} : memref<8x128xf32, #tpu.memory_space<vmem>>, vector<8x128xf32>,
    return
  }
}

</mosaic_0001>

<bundles_post_ra>
// kernel: seq2seq_forward.1
= control target key start
LH: loop header
LB: loop body
LE: loop exit
PB: predicated region body
PF: predicated region fallthrough
CT: control target
= control target key end

     0   :  { %v2219_v1 = vmov 0   ;;  %vm96_vm0 = vcmask 261120   ;;  %v2220_v13 = vmov 0.0|0.0   ;;  %v189_v14 = vlaneseq  ;;  %s2815_s2 = inlined_call_operand.vmem [shape: bf16[32,128], index: 2, kind: input, shape index: {}]   ;;  %s2816_s4 = inlined_call_operand.vmem [shape: bf16[64,256], index: 4, kind: input, shape index: {}]   ;;  %s2817_s0 = inlined_call_operand.vmem [shape: bf16[64,32], index: 0, kind: input, shape index: {}]   ;;  %s2818_s5 = inlined_call_operand.vmem [shape: f32[1,256], index: 5, kind: input, shape index: {}]   ;;  %s2819_s3 = inlined_call_operand.vmem [shape: f32[1,128], index: 3, kind: input, shape index: {}]   ;;  %s2820_s6 = inlined_call_operand.vmem [shape: bf16[32,128], index: 6, kind: input, shape index: {}]   ;;  %s2821_s7 = inlined_call_operand.vmem [shape: bf16[32,128], index: 7, kind: input, shape index: {}]   ;;  %s2822_s9 = inlined_call_operand.vmem [shape: bf16[128,128], index: 9, kind: input, shape index: {}]   ;;  %s2823_s11 = inlined_call_operand.vmem [shape: bf16[128,128], index: 11, kind: input, shape index: {}]   ;;  %s2824_s8 = inlined_call_operand.vmem [shape: f32[1,128], index: 8, kind: input, shape index: {}]   ;;  %s2825_s1 = inlined_call_operand.vmem [shape: f32[8,1], index: 1, kind: input, shape index: {}]   ;;  %s2826_s10 = inlined_call_operand.vmem [shape: f32[1,128], index: 10, kind: input, shape index: {}]   ;;  %s2827_s12 = inlined_call_operand.vmem [shape: f32[1,128], index: 12, kind: input, shape index: {}]   ;;  %s2828_s13 = inlined_call_operand.vmem [shape: f32[8,128], index: 13, kind: output, shape index: {}]  }
   0x1   :  { %v2041_v0 = vld [vmem:[%s2815_s2 + $0x8] sm:$0xff]   ;;  %275 = vmatprep.mubr.bf16.mxu1 %v2219_v1  ;;  %2039 = vset.pattern.permute.xlu1 %v2219_v1  ;;  %v2304_v2 = vld [vmem:[%s2816_s4 + $0x34] ss:$8 sps:$4 sm:$0xff]   ;;  %v2310_v3 = vld [vmem:[%s2816_s4 + $0x30] ss:$8 sps:$4 sm:$0xff]   ;;  %v2222_v41 = vmov 0.0  }
   0x2   :  { %2040 = vset.pattern.permute.xlu0 %v2219_v1  ;;  %1906 = vmatprep.subr.bf16.mxu0 %v2041_v0  ;;  %v2045_v4 = vld [vmem:[%s2815_s2] sm:$0xff]   ;;  %v2050_v8 = vld [vmem:[%s2817_s0 + $0x8] sm:$0xff]   ;;  %v2338_v9 = vld [vmem:[%s2816_s4 + $0x14] ss:$8 sps:$4 sm:$0xff]   ;;  %v2371_v15 = vshrl.u32 %v189_v14, 7  ;;  %vm2223_vm1 = vmmov 0  }
   0x3   :  { %251 = vmatprep.subr.bf16.mxu1 %v2304_v2  ;;  %1907 = vmatpush3.bf16.msra.mxu0 %v2041_v0  ;;  %v2320_v5 = vld [vmem:[%s2816_s4 + $0x24] ss:$8 sps:$4 sm:$0xff]   ;;  %v2325_v6 = vld [vmem:[%s2816_s4 + $0x20] ss:$8 sps:$4 sm:$0xff]   ;;  %v2344_v10 = vld [vmem:[%s2816_s4 + $0x10] ss:$8 sps:$4 sm:$0xff]  }
   0x4   :  { %252 = vmatpush1.bf16.msra.mxu1 %v2310_v3  ;;  %1908 = vmatprep.subr.bf16.mxu0 %v2045_v4  ;;  %v2049_v7 = vld [vmem:[%s2817_s0] sm:$0xff]   ;;  %v191_v16 = vsub.s32 0, %v2371_v15  ;;  %v2058_v39 = vld [vmem:[%s2817_s0 + $0x10] sm:$0xff]   ;;  %v2059_v40 = vld [vmem:[%s2817_s0 + $0x18] sm:$0xff]   ;;  %s2224_s0 = smov 64   ;;  %v195_v53 = vsub.s32 1, %v2371_v15 }
   0x5   :  { %253 = vmatprep.subr.bf16.mxu1 %v2320_v5  ;;  %1910 = vmatprep.mubr.msk.bf16.mxu0 %vm96_vm0, %v2049_v7  ;;  %v2350_v11 = vld [vmem:[%s2816_s4 + $0x4] ss:$8 sps:$4 sm:$0xff]   ;;  %v2357_v12 = vld [vmem:[%s2816_s4] ss:$8 sps:$4 sm:$0xff]   ;;  %vm239_vm2 = vcmask 523264   ;;  %vm1748_vm3 = vcmp.lt.s32.totalorder %v2371_v15, 2 }
   0x6   :  { %v2377_v17 = vld [vmem:[%s2818_s5] sm:$0x3]  ;;  %s2221_s5 = smov 32   ;;  %v2406_v42 = vld [vmem:[%s2820_s6 + $0x8] sm:$0xff]   ;;  %vm1770_vm6 = vcmp.eq.s32.totalorder %v2371_v15, 0 }
   0x7   :  { %1909 = vmatpush3.bf16.msra.mxu0 %v2045_v4  ;;  %v2382_v19 = vrot.slane %v2377_v17, %v191_v16  ;;  %v2387_v20 = vld [vmem:[%s2819_s3] ss:$0 sm:$0xff]  ;;  %v2441_v55 = vrot.slane %v2377_v17, %v195_v53 }
   0x8   :  { %254 = vmatpush1.bf16.msra.mxu1 %v2325_v6  ;;  %1918 = vmatprep.subr.bf16.mxu0 %v2222_v41  ;;  %v2414_v43 = vld [vmem:[%s2820_s6] sm:$0xff]   ;;  %s2225_s6 = smov 96  }
   0x9   :  { %255 = vmatprep.subr.bf16.mxu1 %v2338_v9 }
   0xa   :  { %1911 = vmatmul.mubr.msk.bf16.vlgmr.msra.gmra.mxu0 %vm96_vm0, %v2050_v8 }
   0xb   :  { %1914 = vmatprep.mubr.msk.bf16.mxu0 %vm96_vm0, %v2058_v39  ;;  %1919 = vmatpush3.bf16.msra.mxu0 %v2406_v42 }
   0xc   :  { %256 = vmatpush1.bf16.msra.mxu1 %v2344_v10  ;;  %1920 = vmatprep.subr.bf16.mxu0 %v2222_v41 }
   0xd   :  { %257 = vmatprep.subr.bf16.mxu1 %v2350_v11 }
   0xf   :  { %1921 = vmatpush3.bf16.msra.mxu0 %v2414_v43 }
  0x10   :  { %258 = vmatpush1.bf16.msra.mxu1 %v2357_v12  ;;  %1926 = vmatprep.subr.bf16.mxu0 %v2222_v41 }
  0x11   :  { %413 = vmatprep.subr.bf16.mxu1 %v2304_v2 }
  0x12   :  { %1915 = vmatmul.mubr.msk.bf16.gmra.mxu0 %vm96_vm0, %v2059_v40 }
  0x13   :  { %276 = vmatmul.mubr.bf16.vlgmr.msra.gmra.mxu1 %v2220_v13  ;;  %1922 = vmatprep.mubr.msk.bf16.mxu0 %vm2223_vm1, %v2222_v41 }
  0x14   :  { %414 = vmatpush1.bf16.msra.mxu1 %v2310_v3  ;;  %437 = vmatprep.mubr.bf16.mxu1 %v2219_v1 }
  0x15   :  { %415 = vmatprep.subr.bf16.mxu1 %v2320_v5 }
  0x18   :  { %416 = vmatpush1.bf16.msra.mxu1 %v2325_v6 }
  0x19   :  { %417 = vmatprep.subr.bf16.mxu1 %v2338_v9 }
  0x1c   :  { %418 = vmatpush1.bf16.msra.mxu1 %v2344_v10 }
  0x1d   :  { %419 = vmatprep.subr.bf16.mxu1 %v2350_v11 }
  0x20   :  { %420 = vmatpush1.bf16.msra.mxu1 %v2357_v12 }
  0x21   :  { %1934 = vmatprep.subr.bf16.mxu1 %v2222_v41 }
  0xca   :  { %v2379_v18 = vpop.f32.mrf.mxu0 }
  0xcc   :  { %v143_v21 = vpop.f32.mrf.mxu0 }
  0xcd   :  { %v144_v23 = vadd.f32 %v2387_v20, %v143_v21 }
  0xce   :  { %v2431_v49 = vpop.f32.mrf.mxu0 }
  0xd0   :  { %v146_v50 = vpop.f32.mrf.mxu0 }
  0xd2   :  { %v2433_v51 = vpop.f32.mrf.mxu0 }
  0xd3   :  { %v277_v22 = vpop.f32.mrf.mxu1 }
  0xd4   :  { %v278_v24 = vadd.f32 %v277_v22, %v2382_v19  ;;  %v2435_v52 = vpop.f32.mrf.mxu0 }
  0xd5   :  { %v279_v25 = vpop.f32.mrf.mxu1 }
  0xd6   :  { %v284_v26 = vadd.f32 %v278_v24, %v144_v23  ;;  %v2438_v54 = vpop.f32.mrf.mxu0  ;;  %v280_v57 = vadd.f32 %v279_v25, %v2441_v55 }
  0xd7   :  { %v281_v27 = vpop.f32.mrf.mxu1 }
  0xd8   :  { %2079 = vtanh.f32 %v284_v26  ;;  %v1799_v30 = vmul.f32 -1.442695, %v284_v26  ;;  %v2443_v56 = vpop.f32.mrf.mxu0 }
  0xd9   :  { %v282_v28 = vpop.f32.mrf.mxu1 }
  0xda   :  { %2081 = vpow2.f32 %v1799_v30 }
  0xe5   :  { %v2080_v29 = vpop.eup %2079 }
  0xe6   :  { %294 = vrot.lane.b32.xlu0 %v2080_v29, %s2221_s5 }
  0xe7   :  { %v2082_v31 = vpop.eup %2081 }
  0xe8   :  { %v288_v32 = vadd.f32 1.0, %v2082_v31  ;;  %v147_v31 = vadd.f32 %v2387_v20, %v146_v50 }
  0xea   :  { %2083 = vrcp.f32 %v288_v32 }
  0xf7   :  { %v2084_v33 = vpop.eup %2083 }
  0xf8   :  { %v292_v36 = vmul.f32 0.0, %v2084_v33 }
 0x158   :  { %v295_v34 = vpop.permute.xlu0 %294 }
 0x159   :  { %v297_v35 = vmul.f32 %v2084_v33, %v295_v34 }
 0x15b   :  { %299 = vrot.lane.b32.xlu0 %v297_v35, %s2221_s5 }
 0x1cd   :  { %v300_v37 = vpop.permute.xlu0 %299 }
 0x1ce   :  { %v2393_v38 = vadd.f32 %v300_v37, %v292_v36 }
 0x1d0   :  { %2085 = vtanh.f32 %v2393_v38 }
 0x1dd   :  { %v2086_v44 = vpop.eup %2085 }
 0x1de   :  { %305 = vrot.lane.b32.xlu1 %v2086_v44, %s2221_s5 }
 0x250   :  { %v306_v45 = vpop.permute.xlu1 %305 }
 0x251   :  { %v308_v46 = vmul.f32 %v2084_v33, %v306_v45 }
 0x253   :  { %v309_v47 = vpack.c.bf16 %v308_v46, %v308_v46 }
 0x255   :  { %311 = vrot.lane.b32.xlu1 %v309_v47, %s2224_s0 }
 0x2c7   :  { %v312_v48 = vpop.permute.xlu1 %311 }
 0x2c8   :  { %1923 = vmatmul.mubr.msk.bf16.vlgmr.msra.gmra.mxu0 %vm96_vm0, %v312_v48 }
 0x2c9   :  { %1927 = vmatpush3.bf16.msra.mxu0 %v2406_v42  ;;  %1930 = vmatprep.mubr.msk.bf16.mxu0 %vm2223_vm1, %v2222_v41 }
 0x2ca   :  { %1928 = vmatprep.subr.bf16.mxu0 %v2222_v41 }
 0x2cd   :  { %1929 = vmatpush3.bf16.msra.mxu0 %v2414_v43 }
 0x2ce   :  { %563 = vmatprep.subr.bf16.mxu0 %v2304_v2 }
 0x388   :  { %v362_v58 = vpop.f32.mrf.mxu0 }
 0x389   :  { %v363_v59 = vadd.f32 %v362_v58, %v280_v57 }
 0x38a   :  { %v1924_v60 = vpop.f32.mrf.mxu0 }
 0x38b   :  { %2087 = vtanh.f32 %v363_v59  ;;  %v1803_v0 = vmul.f32 -1.442695, %v363_v59 }
 0x38c   :  { %v365_v61 = vpop.f32.mrf.mxu0 }
 0x38d   :  { %2089 = vpow2.f32 %v1803_v0 }
 0x38e   :  { %v1925_v62 = vpop.f32.mrf.mxu0 }
 0x398   :  { %v2088_v63 = vpop.eup %2087 }
 0x399   :  { %377 = vrot.lane.b32.xlu0 %v2088_v63, %s2221_s5 }
 0x39a   :  { %v2090_v4 = vpop.eup %2089 }
 0x39b   :  { %v371_v7 = vadd.f32 1.0, %v2090_v4 }
 0x39d   :  { %2091 = vrcp.f32 %v371_v7 }
 0x3aa   :  { %v2092_v8 = vpop.eup %2091 }
 0x3ab   :  { %v375_v17 = vmul.f32 0.0, %v2092_v8 }
 0x40b   :  { %v378_v13 = vpop.permute.xlu0 %377 }
 0x40c   :  { %v380_v16 = vmul.f32 %v2092_v8, %v378_v13 }
 0x40e   :  { %382 = vrot.lane.b32.xlu1 %v380_v16, %s2221_s5 }
 0x412   :  { %393 = vrot.lane.b32.xlu1 %v308_v46, %s2224_s0 }
 0x480   :  { %v383_v21 = vpop.permute.xlu1 %382 }
 0x481   :  { %v2449_v22 = vadd.f32 %v383_v21, %v375_v17 }
 0x483   :  { %2093 = vtanh.f32 %v2449_v22 }
 0x484   :  { %v394_v26 = vpop.permute.xlu1 %393 }
 0x490   :  { %v2094_v23 = vpop.eup %2093 }
 0x491   :  { %388 = vrot.lane.b32.xlu0 %v2094_v23, %s2221_s5 }
 0x503   :  { %v389_v24 = vpop.permute.xlu0 %388 }
 0x504   :  { %v391_v25 = vmul.f32 %v2092_v8, %v389_v24 }
 0x506   :  { %397 = vrot.lane.b32.xlu0 %v391_v25, %s2225_s6 }
 0x578   :  { %v398_v27 = vpop.permute.xlu0 %397 }
 0x579   :  { %v400_v28 = vsel %vm96_vm0, %v394_v26, %v398_v27 }
 0x57a   :  { %v401_v29 = vpack.c.bf16 %v400_v28, %v400_v28 }
 0x57c   :  { %1804 = vmatmul.mubr.msk.bf16.vlgmr.msra.gmra.mxu1 %vm239_vm2, %v401_v29 }
 0x57d   :  { %1935 = vmatpush3.bf16.msra.mxu1 %v2406_v42  ;;  %1938 = vmatprep.mubr.msk.bf16.mxu1 %vm2223_vm1, %v2222_v41 }
 0x57e   :  { %1936 = vmatprep.subr.bf16.mxu1 %v2222_v41 }
 0x581   :  { %1937 = vmatpush3.bf16.msra.mxu1 %v2414_v43 }
 0x582   :  { %713 = vmatprep.subr.bf16.mxu1 %v2304_v2 }
 0x63c   :  { %v439_v30 = vpop.f32.mrf.mxu1 }
 0x63d   :  { %v440_v32 = vadd.f32 %v439_v30, %v2382_v19 }
 0x63e   :  { %v441_v33 = vpop.f32.mrf.mxu1 }
 0x63f   :  { %v446_v34 = vadd.f32 %v440_v32, %v147_v31 }
 0x640   :  { %v443_v35 = vpop.f32.mrf.mxu1 }
 0x641   :  { %2095 = vtanh.f32 %v446_v34  ;;  %v1805_v39 = vmul.f32 -1.442695, %v446_v34  ;;  %v152_v35 = vadd.f32 %v2379_v18, %v2387_v20 }
 0x642   :  { %v444_v36 = vpop.f32.mrf.mxu1 }
 0x643   :  { %2097 = vpow2.f32 %v1805_v39 }
 0x64e   :  { %v2096_v37 = vpop.eup %2095 }
 0x64f   :  { %456 = vrot.lane.b32.xlu1 %v2096_v37, %s2221_s5 }
 0x650   :  { %v2098_v40 = vpop.eup %2097 }
 0x651   :  { %v450_v44 = vadd.f32 1.0, %v2098_v40 }
 0x653   :  { %2099 = vrcp.f32 %v450_v44 }
 0x660   :  { %v2100_v45 = vpop.eup %2099 }
 0x661   :  { %v454_v48 = vmul.f32 %v2100_v45, %v2393_v38  ;;  %v442_v38 = vadd.f32 %v441_v33, %v2441_v55 }
 0x6c1   :  { %v457_v46 = vpop.permute.xlu1 %456 }
 0x6c2   :  { %v459_v47 = vmul.f32 %v2100_v45, %v457_v46 }
 0x6c4   :  { %461 = vrot.lane.b32.xlu0 %v459_v47, %s2221_s5 }
 0x736   :  { %v462_v50 = vpop.permute.xlu0 %461 }
 0x737   :  { %v2467_v53 = vadd.f32 %v462_v50, %v454_v48 }
 0x739   :  { %2101 = vtanh.f32 %v2467_v53 }
 0x746   :  { %v2102_v57 = vpop.eup %2101 }
 0x747   :  { %467 = vrot.lane.b32.xlu1 %v2102_v57, %s2221_s5 }
 0x7b9   :  { %v468_v58 = vpop.permute.xlu1 %467 }
 0x7ba   :  { %v470_v59 = vmul.f32 %v2100_v45, %v468_v58 }
 0x7bc   :  { %v471_v60 = vpack.c.bf16 %v470_v59, %v470_v59 }
 0x7be   :  { %473 = vrot.lane.b32.xlu0 %v471_v60, %s2224_s0 }
 0x830   :  { %v474_v61 = vpop.permute.xlu0 %473 }
 0x831   :  { %1931 = vmatmul.mubr.msk.bf16.vlgmr.msra.gmra.mxu0 %vm96_vm0, %v474_v61 }
 0x832   :  { %564 = vmatpush1.bf16.msra.mxu0 %v2310_v3  ;;  %587 = vmatprep.mubr.bf16.mxu0 %v2219_v1 }
 0x833   :  { %565 = vmatprep.subr.bf16.mxu0 %v2320_v5 }
 0x836   :  { %566 = vmatpush1.bf16.msra.mxu0 %v2325_v6 }
 0x837   :  { %567 = vmatprep.subr.bf16.mxu0 %v2338_v9 }
 0x83a   :  { %568 = vmatpush1.bf16.msra.mxu0 %v2344_v10 }
 0x83b   :  { %569 = vmatprep.subr.bf16.mxu0 %v2350_v11 }
 0x83e   :  { %570 = vmatpush1.bf16.msra.mxu0 %v2357_v12 }
 0x83f   :  { %1942 = vmatprep.subr.bf16.mxu0 %v2222_v41 }
 0x8f1   :  { %v512_v62 = vpop.f32.mrf.mxu0 }
 0x8f2   :  { %v513_v63 = vadd.f32 %v512_v62, %v442_v38 }
 0x8f3   :  { %v1932_v0 = vpop.f32.mrf.mxu0 }
 0x8f4   :  { %2103 = vtanh.f32 %v513_v63  ;;  %v1807_v13 = vmul.f32 -1.442695, %v513_v63 }
 0x8f5   :  { %v515_v4 = vpop.f32.mrf.mxu0 }
 0x8f6   :  { %2105 = vpow2.f32 %v1807_v13 }
 0x8f7   :  { %v1933_v7 = vpop.f32.mrf.mxu0 }
 0x901   :  { %v2104_v8 = vpop.eup %2103 }
 0x902   :  { %527 = vrot.lane.b32.xlu1 %v2104_v8, %s2221_s5 }
 0x903   :  { %v2106_v16 = vpop.eup %2105 }
 0x904   :  { %v521_v17 = vadd.f32 1.0, %v2106_v16 }
 0x906   :  { %2107 = vrcp.f32 %v521_v17 }
 0x913   :  { %v2108_v21 = vpop.eup %2107 }
 0x914   :  { %v525_v25 = vmul.f32 %v2108_v21, %v2449_v22 }
 0x974   :  { %v528_v23 = vpop.permute.xlu1 %527 }
 0x975   :  { %v530_v24 = vmul.f32 %v2108_v21, %v528_v23 }
 0x977   :  { %532 = vrot.lane.b32.xlu0 %v530_v24, %s2221_s5 }
 0x97b   :  { %543 = vrot.lane.b32.xlu0 %v470_v59, %s2224_s0 }
 0x9e9   :  { %v533_v26 = vpop.permute.xlu0 %532 }
 0x9ea   :  { %v2487_v27 = vadd.f32 %v533_v26, %v525_v25 }
 0x9ec   :  { %2109 = vtanh.f32 %v2487_v27 }
 0x9ed   :  { %v544_v31 = vpop.permute.xlu0 %543 }
 0x9f9   :  { %v2110_v28 = vpop.eup %2109 }
 0x9fa   :  { %538 = vrot.lane.b32.xlu1 %v2110_v28, %s2221_s5 }
 0xa6c   :  { %v539_v29 = vpop.permute.xlu1 %538 }
 0xa6d   :  { %v541_v30 = vmul.f32 %v2108_v21, %v539_v29 }
 0xa6f   :  { %547 = vrot.lane.b32.xlu1 %v541_v30, %s2225_s6 }
 0xae1   :  { %v548_v32 = vpop.permute.xlu1 %547 }
 0xae2   :  { %v550_v33 = vsel %vm96_vm0, %v544_v31, %v548_v32 }
 0xae3   :  { %v551_v34 = vpack.c.bf16 %v550_v33, %v550_v33 }
 0xae5   :  { %1808 = vmatmul.mubr.msk.bf16.vlgmr.msra.gmra.mxu0 %vm239_vm2, %v551_v34 }
 0xae6   :  { %1943 = vmatpush3.bf16.msra.mxu0 %v2406_v42  ;;  %1946 = vmatprep.mubr.msk.bf16.mxu0 %vm2223_vm1, %v2222_v41 }
 0xae7   :  { %1944 = vmatprep.subr.bf16.mxu0 %v2222_v41 }
 0xaea   :  { %1945 = vmatpush3.bf16.msra.mxu0 %v2414_v43 }
 0xaeb   :  { %863 = vmatprep.subr.bf16.mxu0 %v2304_v2 }
 0xba5   :  { %v589_v22 = vpop.f32.mrf.mxu0 }
 0xba6   :  { %v590_v36 = vadd.f32 %v589_v22, %v2382_v19 }
 0xba7   :  { %v591_v37 = vpop.f32.mrf.mxu0 }
 0xba8   :  { %v596_v39 = vadd.f32 %v590_v36, %v152_v35 }
 0xba9   :  { %v593_v40 = vpop.f32.mrf.mxu0 }
 0xbaa   :  { %2111 = vtanh.f32 %v596_v39  ;;  %v1809_v46 = vmul.f32 -1.442695, %v596_v39  ;;  %v155_v39 = vadd.f32 %v2431_v49, %v2387_v20 }
 0xbab   :  { %v594_v44 = vpop.f32.mrf.mxu0 }
 0xbac   :  { %2113 = vpow2.f32 %v1809_v46 }
 0xbb7   :  { %v2112_v45 = vpop.eup %2111 }
 0xbb8   :  { %606 = vrot.lane.b32.xlu0 %v2112_v45, %s2221_s5 }
 0xbb9   :  { %v2114_v47 = vpop.eup %2113 }
 0xbba   :  { %v600_v48 = vadd.f32 1.0, %v2114_v47 }
 0xbbc   :  { %2115 = vrcp.f32 %v600_v48 }
 0xbc9   :  { %v2116_v50 = vpop.eup %2115 }
 0xbca   :  { %v604_v18 = vmul.f32 %v2116_v50, %v2467_v53  ;;  %v592_v53 = vadd.f32 %v591_v37, %v2441_v55 }
 0xc2a   :  { %v607_v57 = vpop.permute.xlu0 %606 }
 0xc2b   :  { %v609_v58 = vmul.f32 %v2116_v50, %v607_v57 }
 0xc2d   :  { %611 = vrot.lane.b32.xlu1 %v609_v58, %s2221_s5 }
 0xc9f   :  { %v612_v59 = vpop.permute.xlu1 %611 }
 0xca0   :  { %v2506_v60 = vadd.f32 %v612_v59, %v604_v18 }
 0xca2   :  { %2117 = vtanh.f32 %v2506_v60 }
 0xcaf   :  { %v2118_v61 = vpop.eup %2117 }
 0xcb0   :  { %617 = vrot.lane.b32.xlu0 %v2118_v61, %s2221_s5 }
 0xd22   :  { %v618_v38 = vpop.permute.xlu0 %617 }
 0xd23   :  { %v620_v62 = vmul.f32 %v2116_v50, %v618_v38 }
 0xd25   :  { %v621_v63 = vpack.c.bf16 %v620_v62, %v620_v62 }
 0xd27   :  { %623 = vrot.lane.b32.xlu1 %v621_v63, %s2224_s0 }
 0xd99   :  { %v624_v0 = vpop.permute.xlu1 %623 }
 0xd9a   :  { %1939 = vmatmul.mubr.msk.bf16.vlgmr.msra.gmra.mxu1 %vm96_vm0, %v624_v0 }
 0xd9b   :  { %714 = vmatpush1.bf16.msra.mxu1 %v2310_v3  ;;  %737 = vmatprep.mubr.bf16.mxu1 %v2219_v1 }
 0xd9c   :  { %715 = vmatprep.subr.bf16.mxu1 %v2320_v5 }
 0xd9f   :  { %716 = vmatpush1.bf16.msra.mxu1 %v2325_v6 }
 0xda0   :  { %717 = vmatprep.subr.bf16.mxu1 %v2338_v9 }
 0xda3   :  { %718 = vmatpush1.bf16.msra.mxu1 %v2344_v10 }
 0xda4   :  { %719 = vmatprep.subr.bf16.mxu1 %v2350_v11 }
 0xda7   :  { %720 = vmatpush1.bf16.msra.mxu1 %v2357_v12 }
 0xda8   :  { %1950 = vmatprep.subr.bf16.mxu1 %v2222_v41 }
 0xe5a   :  { %v662_v4 = vpop.f32.mrf.mxu1 }
 0xe5b   :  { %v663_v7 = vadd.f32 %v662_v4, %v592_v53 }
 0xe5c   :  { %v1940_v8 = vpop.f32.mrf.mxu1 }
 0xe5d   :  { %2119 = vtanh.f32 %v663_v7  ;;  %v1811_v21 = vmul.f32 -1.442695, %v663_v7 }
 0xe5e   :  { %v665_v13 = vpop.f32.mrf.mxu1 }
 0xe5f   :  { %2121 = vpow2.f32 %v1811_v21 }
 0xe60   :  { %v1941_v16 = vpop.f32.mrf.mxu1 }
 0xe6a   :  { %v2120_v17 = vpop.eup %2119 }
 0xe6b   :  { %677 = vrot.lane.b32.xlu0 %v2120_v17, %s2221_s5 }
 0xe6c   :  { %v2122_v23 = vpop.eup %2121 }
 0xe6d   :  { %v671_v24 = vadd.f32 1.0, %v2122_v23 }
 0xe6f   :  { %2123 = vrcp.f32 %v671_v24 }
 0xe7c   :  { %v2124_v25 = vpop.eup %2123 }
 0xe7d   :  { %v675_v29 = vmul.f32 %v2124_v25, %v2487_v27 }
 0xedd   :  { %v678_v26 = vpop.permute.xlu0 %677 }
 0xede   :  { %v680_v28 = vmul.f32 %v2124_v25, %v678_v26 }
 0xee0   :  { %682 = vrot.lane.b32.xlu1 %v680_v28, %s2221_s5 }
 0xee4   :  { %693 = vrot.lane.b32.xlu1 %v620_v62, %s2224_s0 }
 0xf52   :  { %v683_v30 = vpop.permute.xlu1 %682 }
 0xf53   :  { %v2526_v31 = vadd.f32 %v683_v30, %v675_v29 }
 0xf55   :  { %2125 = vtanh.f32 %v2526_v31 }
 0xf56   :  { %v694_v22 = vpop.permute.xlu1 %693 }
 0xf62   :  { %v2126_v32 = vpop.eup %2125 }
 0xf63   :  { %688 = vrot.lane.b32.xlu0 %v2126_v32, %s2221_s5 }
 0xfd5   :  { %v689_v33 = vpop.permute.xlu0 %688 }
 0xfd6   :  { %v691_v34 = vmul.f32 %v2124_v25, %v689_v33 }
 0xfd8   :  { %697 = vrot.lane.b32.xlu0 %v691_v34, %s2225_s6 }
0x104a   :  { %v698_v35 = vpop.permute.xlu0 %697 }
0x104b   :  { %v700_v36 = vsel %vm96_vm0, %v694_v22, %v698_v35 }
0x104c   :  { %v701_v37 = vpack.c.bf16 %v700_v36, %v700_v36 }
0x104e   :  { %1812 = vmatmul.mubr.msk.bf16.vlgmr.msra.gmra.mxu1 %vm239_vm2, %v701_v37 }
0x104f   :  { %1951 = vmatpush3.bf16.msra.mxu1 %v2406_v42  ;;  %1954 = vmatprep.mubr.msk.bf16.mxu1 %vm2223_vm1, %v2222_v41 }
0x1050   :  { %1952 = vmatprep.subr.bf16.mxu1 %v2222_v41 }
0x1053   :  { %1953 = vmatpush3.bf16.msra.mxu1 %v2414_v43 }
0x1054   :  { %1013 = vmatprep.subr.bf16.mxu1 %v2304_v2 }
0x110e   :  { %v739_v27 = vpop.f32.mrf.mxu1 }
0x110f   :  { %v740_v40 = vadd.f32 %v739_v27, %v2382_v19 }
0x1110   :  { %v741_v44 = vpop.f32.mrf.mxu1 }
0x1111   :  { %v746_v45 = vadd.f32 %v740_v40, %v155_v39 }
0x1112   :  { %v743_v46 = vpop.f32.mrf.mxu1 }
0x1113   :  { %2127 = vtanh.f32 %v746_v45  ;;  %v1813_v50 = vmul.f32 -1.442695, %v746_v45 }
0x1114   :  { %v744_v47 = vpop.f32.mrf.mxu1 }
0x1115   :  { %2129 = vpow2.f32 %v1813_v50 }
0x1120   :  { %v2128_v48 = vpop.eup %2127 }
0x1121   :  { %756 = vrot.lane.b32.xlu1 %v2128_v48, %s2221_s5 }
0x1122   :  { %v2130_v57 = vpop.eup %2129 }
0x1123   :  { %v750_v58 = vadd.f32 1.0, %v2130_v57 }
0x1125   :  { %2131 = vrcp.f32 %v750_v58 }
0x1132   :  { %v2132_v18 = vpop.eup %2131 }
0x1133   :  { %v754_v49 = vmul.f32 %v2132_v18, %v2506_v60  ;;  %v742_v60 = vadd.f32 %v741_v44, %v2441_v55  ;;  %v160_v44 = vadd.f32 %v2387_v20, %v2435_v52 }
0x1193   :  { %v757_v59 = vpop.permute.xlu1 %756 }
0x1194   :  { %v759_v61 = vmul.f32 %v2132_v18, %v757_v59 }
0x1196   :  { %761 = vrot.lane.b32.xlu0 %v759_v61, %s2221_s5 }
0x1208   :  { %v762_v38 = vpop.permute.xlu0 %761 }
0x1209   :  { %v2545_v62 = vadd.f32 %v762_v38, %v754_v49 }
0x120b   :  { %2133 = vtanh.f32 %v2545_v62 }
0x1218   :  { %v2134_v63 = vpop.eup %2133 }
0x1219   :  { %767 = vrot.lane.b32.xlu1 %v2134_v63, %s2221_s5 }
0x128b   :  { %v768_v0 = vpop.permute.xlu1 %767 }
0x128c   :  { %v770_v53 = vmul.f32 %v2132_v18, %v768_v0 }
0x128e   :  { %v771_v4 = vpack.c.bf16 %v770_v53, %v770_v53 }
0x1290   :  { %773 = vrot.lane.b32.xlu0 %v771_v4, %s2224_s0 }
0x1302   :  { %v774_v7 = vpop.permute.xlu0 %773 }
0x1303   :  { %1947 = vmatmul.mubr.msk.bf16.vlgmr.msra.gmra.mxu0 %vm96_vm0, %v774_v7 }
0x1304   :  { %864 = vmatpush1.bf16.msra.mxu0 %v2310_v3  ;;  %887 = vmatprep.mubr.bf16.mxu0 %v2219_v1 }
0x1305   :  { %865 = vmatprep.subr.bf16.mxu0 %v2320_v5 }
0x1308   :  { %866 = vmatpush1.bf16.msra.mxu0 %v2325_v6 }
0x1309   :  { %867 = vmatprep.subr.bf16.mxu0 %v2338_v9 }
0x130c   :  { %868 = vmatpush1.bf16.msra.mxu0 %v2344_v10 }
0x130d   :  { %869 = vmatprep.subr.bf16.mxu0 %v2350_v11 }
0x1310   :  { %870 = vmatpush1.bf16.msra.mxu0 %v2357_v12 }
0x1311   :  { %1958 = vmatprep.subr.bf16.mxu0 %v2222_v41 }
0x13c3   :  { %v812_v8 = vpop.f32.mrf.mxu0 }
0x13c4   :  { %v813_v13 = vadd.f32 %v812_v8, %v742_v60 }
0x13c5   :  { %v1948_v16 = vpop.f32.mrf.mxu0 }
0x13c6   :  { %2135 = vtanh.f32 %v813_v13  ;;  %v1815_v24 = vmul.f32 -1.442695, %v813_v13 }
0x13c7   :  { %v815_v17 = vpop.f32.mrf.mxu0 }
0x13c8   :  { %2137 = vpow2.f32 %v1815_v24 }
0x13c9   :  { %v1949_v21 = vpop.f32.mrf.mxu0 }
0x13d3   :  { %v2136_v23 = vpop.eup %2135 }
0x13d4   :  { %827 = vrot.lane.b32.xlu1 %v2136_v23, %s2221_s5 }
0x13d5   :  { %v2138_v25 = vpop.eup %2137 }
0x13d6   :  { %v821_v26 = vadd.f32 1.0, %v2138_v25 }
0x13d8   :  { %2139 = vrcp.f32 %v821_v26 }
0x13e5   :  { %v2140_v28 = vpop.eup %2139 }
0x13e6   :  { %v825_v32 = vmul.f32 %v2140_v28, %v2526_v31 }
0x1446   :  { %v828_v29 = vpop.permute.xlu1 %827 }
0x1447   :  { %v830_v30 = vmul.f32 %v2140_v28, %v828_v29 }
0x1449   :  { %832 = vrot.lane.b32.xlu0 %v830_v30, %s2221_s5 }
0x144d   :  { %843 = vrot.lane.b32.xlu0 %v770_v53, %s2224_s0 }
0x14bb   :  { %v833_v33 = vpop.permute.xlu0 %832 }
0x14bc   :  { %v2565_v34 = vadd.f32 %v833_v33, %v825_v32 }
0x14be   :  { %2141 = vtanh.f32 %v2565_v34 }
0x14bf   :  { %v844_v37 = vpop.permute.xlu0 %843 }
0x14cb   :  { %v2142_v22 = vpop.eup %2141 }
0x14cc   :  { %838 = vrot.lane.b32.xlu1 %v2142_v22, %s2221_s5 }
0x153e   :  { %v839_v35 = vpop.permute.xlu1 %838 }
0x153f   :  { %v841_v36 = vmul.f32 %v2140_v28, %v839_v35 }
0x1541   :  { %847 = vrot.lane.b32.xlu1 %v841_v36, %s2225_s6 }
0x15b3   :  { %v848_v27 = vpop.permute.xlu1 %847 }
0x15b4   :  { %v850_v39 = vsel %vm96_vm0, %v844_v37, %v848_v27 }
0x15b5   :  { %v851_v40 = vpack.c.bf16 %v850_v39, %v850_v39 }
0x15b7   :  { %1816 = vmatmul.mubr.msk.bf16.vlgmr.msra.gmra.mxu0 %vm239_vm2, %v851_v40 }
0x15b8   :  { %1959 = vmatpush3.bf16.msra.mxu0 %v2406_v42  ;;  %1962 = vmatprep.mubr.msk.bf16.mxu0 %vm2223_vm1, %v2222_v41 }
0x15b9   :  { %1960 = vmatprep.subr.bf16.mxu0 %v2222_v41 }
0x15bc   :  { %1961 = vmatpush3.bf16.msra.mxu0 %v2414_v43 }
0x15bd   :  { %1163 = vmatprep.subr.bf16.mxu0 %v2304_v2 }
0x1677   :  { %v889_v31 = vpop.f32.mrf.mxu0 }
0x1678   :  { %v890_v45 = vadd.f32 %v889_v31, %v2382_v19 }
0x1679   :  { %v891_v46 = vpop.f32.mrf.mxu0 }
0x167a   :  { %v896_v47 = vadd.f32 %v890_v45, %v160_v44  ;;  %v163_v45 = vadd.f32 %v2387_v20, %v2443_v56 }
0x167b   :  { %v893_v48 = vpop.f32.mrf.mxu0 }
0x167c   :  { %2143 = vtanh.f32 %v896_v47  ;;  %v1817_v58 = vmul.f32 -1.442695, %v896_v47 }
0x167d   :  { %v894_v50 = vpop.f32.mrf.mxu0 }
0x167e   :  { %2145 = vpow2.f32 %v1817_v58 }
0x1689   :  { %v2144_v57 = vpop.eup %2143 }
0x168a   :  { %906 = vrot.lane.b32.xlu0 %v2144_v57, %s2221_s5 }
0x168b   :  { %v2146_v18 = vpop.eup %2145 }
0x168c   :  { %v900_v59 = vadd.f32 1.0, %v2146_v18 }
0x168e   :  { %2147 = vrcp.f32 %v900_v59 }
0x169b   :  { %v2148_v61 = vpop.eup %2147 }
0x169c   :  { %v904_v52 = vmul.f32 %v2148_v61, %v2545_v62  ;;  %v892_v62 = vadd.f32 %v891_v46, %v2441_v55 }
0x16fc   :  { %v907_v49 = vpop.permute.xlu0 %906 }
0x16fd   :  { %v909_v38 = vmul.f32 %v2148_v61, %v907_v49 }
0x16ff   :  { %911 = vrot.lane.b32.xlu1 %v909_v38, %s2221_s5 }
0x1771   :  { %v912_v63 = vpop.permute.xlu1 %911 }
0x1772   :  { %v2584_v0 = vadd.f32 %v912_v63, %v904_v52 }
0x1774   :  { %2149 = vtanh.f32 %v2584_v0 }
0x1781   :  { %v2150_v53 = vpop.eup %2149 }
0x1782   :  { %917 = vrot.lane.b32.xlu0 %v2150_v53, %s2221_s5 }
0x17f4   :  { %v918_v4 = vpop.permute.xlu0 %917 }
0x17f5   :  { %v920_v7 = vmul.f32 %v2148_v61, %v918_v4 }
0x17f7   :  { %v921_v60 = vpack.c.bf16 %v920_v7, %v920_v7 }
0x17f9   :  { %923 = vrot.lane.b32.xlu1 %v921_v60, %s2224_s0 }
0x186b   :  { %v924_v8 = vpop.permute.xlu1 %923 }
0x186c   :  { %1955 = vmatmul.mubr.msk.bf16.vlgmr.msra.gmra.mxu1 %vm96_vm0, %v924_v8 }
0x186d   :  { %1014 = vmatpush1.bf16.msra.mxu1 %v2310_v3  ;;  %1037 = vmatprep.mubr.bf16.mxu1 %v2219_v1 }
0x186e   :  { %1015 = vmatprep.subr.bf16.mxu1 %v2320_v5 }
0x1871   :  { %1016 = vmatpush1.bf16.msra.mxu1 %v2325_v6 }
0x1872   :  { %1017 = vmatprep.subr.bf16.mxu1 %v2338_v9 }
0x1875   :  { %1018 = vmatpush1.bf16.msra.mxu1 %v2344_v10 }
0x1876   :  { %1019 = vmatprep.subr.bf16.mxu1 %v2350_v11 }
0x1879   :  { %1020 = vmatpush1.bf16.msra.mxu1 %v2357_v12 }
0x187a   :  { %1966 = vmatprep.subr.bf16.mxu1 %v2222_v41 }
0x192c   :  { %v962_v13 = vpop.f32.mrf.mxu1 }
0x192d   :  { %v963_v16 = vadd.f32 %v962_v13, %v892_v62 }
0x192e   :  { %v1956_v17 = vpop.f32.mrf.mxu1 }
0x192f   :  { %2151 = vtanh.f32 %v963_v16  ;;  %v1819_v25 = vmul.f32 -1.442695, %v963_v16 }
0x1930   :  { %v965_v21 = vpop.f32.mrf.mxu1 }
0x1931   :  { %2153 = vpow2.f32 %v1819_v25 }
0x1932   :  { %v1957_v23 = vpop.f32.mrf.mxu1 }
0x193c   :  { %v2152_v24 = vpop.eup %2151 }
0x193d   :  { %977 = vrot.lane.b32.xlu0 %v2152_v24, %s2221_s5 }
0x193e   :  { %v2154_v26 = vpop.eup %2153 }
0x193f   :  { %v971_v28 = vadd.f32 1.0, %v2154_v26 }
0x1941   :  { %2155 = vrcp.f32 %v971_v28 }
0x194e   :  { %v2156_v29 = vpop.eup %2155 }
0x194f   :  { %v975_v33 = vmul.f32 %v2156_v29, %v2565_v34 }
0x19af   :  { %v978_v30 = vpop.permute.xlu0 %977 }
0x19b0   :  { %v980_v32 = vmul.f32 %v2156_v29, %v978_v30 }
0x19b2   :  { %982 = vrot.lane.b32.xlu1 %v980_v32, %s2221_s5 }
0x19b6   :  { %993 = vrot.lane.b32.xlu1 %v920_v7, %s2224_s0 }
0x1a24   :  { %v983_v22 = vpop.permute.xlu1 %982 }
0x1a25   :  { %v2604_v35 = vadd.f32 %v983_v22, %v975_v33 }
0x1a27   :  { %2157 = vtanh.f32 %v2604_v35 }
0x1a28   :  { %v994_v39 = vpop.permute.xlu1 %993 }
0x1a34   :  { %v2158_v36 = vpop.eup %2157 }
0x1a35   :  { %988 = vrot.lane.b32.xlu0 %v2158_v36, %s2221_s5  ;;  %v168_v36 = vadd.f32 %v2433_v51, %v2387_v20 }
0x1aa7   :  { %v989_v37 = vpop.permute.xlu0 %988 }
0x1aa8   :  { %v991_v27 = vmul.f32 %v2156_v29, %v989_v37 }
0x1aaa   :  { %997 = vrot.lane.b32.xlu0 %v991_v27, %s2225_s6 }
0x1b1c   :  { %v998_v40 = vpop.permute.xlu0 %997 }
0x1b1d   :  { %v1000_v31 = vsel %vm96_vm0, %v994_v39, %v998_v40 }
0x1b1e   :  { %v1001_v44 = vpack.c.bf16 %v1000_v31, %v1000_v31 }
0x1b20   :  { %1820 = vmatmul.mubr.msk.bf16.vlgmr.msra.gmra.mxu1 %vm239_vm2, %v1001_v44 }
0x1b21   :  { %1967 = vmatpush3.bf16.msra.mxu1 %v2406_v42  ;;  %1970 = vmatprep.mubr.msk.bf16.mxu1 %vm2223_vm1, %v2222_v41 }
0x1b22   :  { %1968 = vmatprep.subr.bf16.mxu1 %v2222_v41 }
0x1b25   :  { %1969 = vmatpush3.bf16.msra.mxu1 %v2414_v43 }
0x1b26   :  { %1313 = vmatprep.subr.bf16.mxu1 %v2304_v2 }
0x1be0   :  { %v1039_v34 = vpop.f32.mrf.mxu1 }
0x1be1   :  { %v1040_v46 = vadd.f32 %v1039_v34, %v2382_v19 }
0x1be2   :  { %v1041_v47 = vpop.f32.mrf.mxu1 }
0x1be3   :  { %v1046_v48 = vadd.f32 %v1040_v46, %v163_v45 }
0x1be4   :  { %v1043_v50 = vpop.f32.mrf.mxu1 }
0x1be5   :  { %2159 = vtanh.f32 %v1046_v48  ;;  %v1821_v18 = vmul.f32 -1.442695, %v1046_v48 }
0x1be6   :  { %v1044_v57 = vpop.f32.mrf.mxu1 }
0x1be7   :  { %2161 = vpow2.f32 %v1821_v18 }
0x1bf2   :  { %v2160_v58 = vpop.eup %2159 }
0x1bf3   :  { %1056 = vrot.lane.b32.xlu1 %v2160_v58, %s2221_s5 }
0x1bf4   :  { %v2162_v59 = vpop.eup %2161 }
0x1bf5   :  { %v1050_v61 = vadd.f32 1.0, %v2162_v59 }
0x1bf7   :  { %2163 = vrcp.f32 %v1050_v61  ;;  %v2211_v61 = vld [vmem:[%s2816_s4 + $0x30] ss:$8 sps:$4 sm:$0xff]  }
0x1c04   :  { %v2164_v2 = vpop.eup %2163 }
0x1c05   :  { %v1054_v56 = vmul.f32 %v2164_v2, %v2584_v0  ;;  %v1042_v0 = vadd.f32 %v1041_v47, %v2441_v55 }
0x1c65   :  { %v1057_v49 = vpop.permute.xlu1 %1056 }
0x1c66   :  { %v1059_v38 = vmul.f32 %v2164_v2, %v1057_v49  ;;  %v2213_v49 = vld [vmem:[%s2816_s4 + $0x20] ss:$8 sps:$4 sm:$0xff]  }
0x1c68   :  { %1061 = vrot.lane.b32.xlu0 %v1059_v38, %s2221_s5  ;;  %v2214_v38 = vld [vmem:[%s2816_s4 + $0x14] ss:$8 sps:$4 sm:$0xff]  }
0x1cda   :  { %v1062_v52 = vpop.permute.xlu0 %1061 }
0x1cdb   :  { %v2623_v63 = vadd.f32 %v1062_v52, %v1054_v56  ;;  %v2215_v56 = vld [vmem:[%s2816_s4 + $0x10] ss:$8 sps:$4 sm:$0xff]   ;;  %v2217_v52 = vld [vmem:[%s2816_s4] ss:$8 sps:$4 sm:$0xff]  }
0x1cdd   :  { %2165 = vtanh.f32 %v2623_v63 }
0x1cea   :  { %v2166_v53 = vpop.eup %2165 }
0x1ceb   :  { %1067 = vrot.lane.b32.xlu1 %v2166_v53, %s2221_s5 }
0x1d5d   :  { %v1068_v4 = vpop.permute.xlu1 %1067 }
0x1d5e   :  { %v1070_v7 = vmul.f32 %v2164_v2, %v1068_v4  ;;  %v2212_v2 = vld [vmem:[%s2816_s4 + $0x24] ss:$8 sps:$4 sm:$0xff]  }
0x1d60   :  { %v1071_v60 = vpack.c.bf16 %v1070_v7, %v1070_v7 }
0x1d62   :  { %1073 = vrot.lane.b32.xlu0 %v1071_v60, %s2224_s0 }
0x1dd4   :  { %v1074_v8 = vpop.permute.xlu0 %1073 }
0x1dd5   :  { %1963 = vmatmul.mubr.msk.bf16.vlgmr.msra.gmra.mxu0 %vm96_vm0, %v1074_v8 }
0x1dd6   :  { %1164 = vmatpush1.bf16.msra.mxu0 %v2310_v3  ;;  %1187 = vmatprep.mubr.bf16.mxu0 %v2219_v1 }
0x1dd7   :  { %1165 = vmatprep.subr.bf16.mxu0 %v2320_v5 }
0x1dda   :  { %1166 = vmatpush1.bf16.msra.mxu0 %v2325_v6 }
0x1ddb   :  { %1167 = vmatprep.subr.bf16.mxu0 %v2338_v9 }
0x1dde   :  { %1168 = vmatpush1.bf16.msra.mxu0 %v2344_v10 }
0x1ddf   :  { %1169 = vmatprep.subr.bf16.mxu0 %v2350_v11 }
0x1de2   :  { %1170 = vmatpush1.bf16.msra.mxu0 %v2357_v12 }
0x1de3   :  { %1974 = vmatprep.subr.bf16.mxu0 %v2222_v41 }
0x1e95   :  { %v1112_v62 = vpop.f32.mrf.mxu0 }
0x1e96   :  { %v1113_v3 = vadd.f32 %v1112_v62, %v1042_v0 }
0x1e97   :  { %v1964_v13 = vpop.f32.mrf.mxu0 }
0x1e98   :  { %2167 = vtanh.f32 %v1113_v3  ;;  %v1823_v6 = vmul.f32 -1.442695, %v1113_v3 }
0x1e99   :  { %v1115_v16 = vpop.f32.mrf.mxu0 }
0x1e9a   :  { %2169 = vpow2.f32 %v1823_v6 }
0x1e9b   :  { %v1965_v5 = vpop.f32.mrf.mxu0 }
0x1ea5   :  { %v2168_v17 = vpop.eup %2167 }
0x1ea6   :  { %1127 = vrot.lane.b32.xlu1 %v2168_v17, %s2221_s5 }
0x1ea7   :  { %v2170_v9 = vpop.eup %2169 }
0x1ea8   :  { %v1121_v10 = vadd.f32 1.0, %v2170_v9 }
0x1eaa   :  { %2171 = vrcp.f32 %v1121_v10 }
0x1eb7   :  { %v2172_v11 = vpop.eup %2171 }
0x1eb8   :  { %v1125_v23 = vmul.f32 %v2172_v11, %v2604_v35 }
0x1f18   :  { %v1128_v12 = vpop.permute.xlu1 %1127 }
0x1f19   :  { %v1130_v21 = vmul.f32 %v2172_v11, %v1128_v12 }
0x1f1b   :  { %1132 = vrot.lane.b32.xlu0 %v1130_v21, %s2221_s5 }
0x1f1f   :  { %1143 = vrot.lane.b32.xlu0 %v1070_v7, %s2224_s0 }
0x1f8d   :  { %v1133_v24 = vpop.permute.xlu0 %1132 }
0x1f8e   :  { %v2643_v25 = vadd.f32 %v1133_v24, %v1125_v23 }
0x1f90   :  { %2173 = vtanh.f32 %v2643_v25 }
0x1f91   :  { %v1144_v30 = vpop.permute.xlu0 %1143 }
0x1f9d   :  { %v2174_v26 = vpop.eup %2173 }
0x1f9e   :  { %1138 = vrot.lane.b32.xlu1 %v2174_v26, %s2221_s5 }
0x2010   :  { %v1139_v28 = vpop.permute.xlu1 %1138 }
0x2011   :  { %v1141_v29 = vmul.f32 %v2172_v11, %v1139_v28 }
0x2013   :  { %1147 = vrot.lane.b32.xlu1 %v1141_v29, %s2225_s6  ;;  %v2218_v29 = vld [vmem:[%s2819_s3] ss:$0 sm:$0xff] }
0x2085   :  { %v1148_v32 = vpop.permute.xlu1 %1147 }
0x2086   :  { %v1150_v33 = vsel %vm96_vm0, %v1144_v30, %v1148_v32  ;;  %v171_v30 = vadd.f32 %v2218_v29, %v2438_v54 }
0x2087   :  { %v1151_v22 = vpack.c.bf16 %v1150_v33, %v1150_v33 }
0x2089   :  { %1824 = vmatmul.mubr.msk.bf16.vlgmr.msra.gmra.mxu0 %vm239_vm2, %v1151_v22 }
0x208a   :  { %1975 = vmatpush3.bf16.msra.mxu0 %v2406_v42  ;;  %1978 = vmatprep.mubr.msk.bf16.mxu0 %vm2223_vm1, %v2222_v41 }
0x208b   :  { %1976 = vmatprep.subr.bf16.mxu0 %v2222_v41 }
0x208e   :  { %1977 = vmatpush3.bf16.msra.mxu0 %v2414_v43 }
0x208f   :  { %1982 = vmatprep.subr.bf16.mxu0 %v2222_v41 }
0x2149   :  { %v1189_v35 = vpop.f32.mrf.mxu0 }
0x214a   :  { %v1190_v37 = vadd.f32 %v1189_v35, %v2382_v19 }
0x214b   :  { %v1191_v27 = vpop.f32.mrf.mxu0 }
0x214c   :  { %v1196_v39 = vadd.f32 %v1190_v37, %v168_v36 }
0x214d   :  { %v1193_v40 = vpop.f32.mrf.mxu0 }
0x214e   :  { %2175 = vtanh.f32 %v1196_v39  ;;  %v1825_v44 = vmul.f32 -1.442695, %v1196_v39 }
0x214f   :  { %v1194_v42 = vpop.f32.mrf.mxu0 }
0x2150   :  { %2177 = vpow2.f32 %v1825_v44 }
0x215b   :  { %v2176_v31 = vpop.eup %2175 }
0x215c   :  { %1206 = vrot.lane.b32.xlu0 %v2176_v31, %s2221_s5 }
0x215d   :  { %v2178_v34 = vpop.eup %2177 }
0x215e   :  { %v1200_v43 = vadd.f32 1.0, %v2178_v34 }
0x2160   :  { %2179 = vrcp.f32 %v1200_v43 }
0x216d   :  { %v2180_v45 = vpop.eup %2179 }
0x216e   :  { %v1204_v20 = vmul.f32 %v2180_v45, %v2623_v63  ;;  %v1192_v63 = vadd.f32 %v1191_v27, %v2441_v55 }
0x21ce   :  { %v1207_v46 = vpop.permute.xlu0 %1206 }
0x21cf   :  { %v1209_v47 = vmul.f32 %v2180_v45, %v1207_v46 }
0x21d1   :  { %1211 = vrot.lane.b32.xlu1 %v1209_v47, %s2221_s5 }
0x2243   :  { %v1212_v51 = vpop.permute.xlu1 %1211 }
0x2244   :  { %v2662_v48 = vadd.f32 %v1212_v51, %v1204_v20 }
0x2246   :  { %2181 = vtanh.f32 %v2662_v48 }
0x2253   :  { %v2182_v50 = vpop.eup %2181 }
0x2254   :  { %1217 = vrot.lane.b32.xlu0 %v2182_v50, %s2221_s5 }
0x22c6   :  { %v1218_v57 = vpop.permute.xlu0 %1217 }
0x22c7   :  { %v1220_v58 = vmul.f32 %v2180_v45, %v1218_v57 }
0x22c9   :  { %v1221_v18 = vpack.c.bf16 %v1220_v58, %v1220_v58 }
0x22cb   :  { %1223 = vrot.lane.b32.xlu1 %v1221_v18, %s2224_s0 }
0x233d   :  { %v1224_v59 = vpop.permute.xlu1 %1223 }
0x233e   :  { %1971 = vmatmul.mubr.msk.bf16.vlgmr.msra.gmra.mxu1 %vm96_vm0, %v1224_v59 }
0x233f   :  { %1314 = vmatpush1.bf16.msra.mxu1 %v2211_v61  ;;  %1337 = vmatprep.mubr.bf16.mxu1 %v2219_v1  ;;  %v2216_v1 = vld [vmem:[%s2816_s4 + $0x4] ss:$8 sps:$4 sm:$0xff]  }
0x2340   :  { %1315 = vmatprep.subr.bf16.mxu1 %v2212_v2 }
0x2343   :  { %1316 = vmatpush1.bf16.msra.mxu1 %v2213_v49 }
0x2344   :  { %1317 = vmatprep.subr.bf16.mxu1 %v2214_v38 }
0x2347   :  { %1318 = vmatpush1.bf16.msra.mxu1 %v2215_v56 }
0x2348   :  { %1319 = vmatprep.subr.bf16.mxu1 %v2216_v1 }
0x234b   :  { %1320 = vmatpush1.bf16.msra.mxu1 %v2217_v52 }
0x234c   :  { %1990 = vmatprep.subr.bf16.mxu1 %v2222_v41 }
0x23fe   :  { %v1262_v53 = vpop.f32.mrf.mxu1 }
0x23ff   :  { %v1263_v4 = vadd.f32 %v1262_v53, %v1192_v63  ;;  %v2061_v53 = vld [vmem:[%s2821_s7 + $0x8] sm:$0xff]  }
0x2400   :  { %v1972_v7 = vpop.f32.mrf.mxu1 }
0x2401   :  { %2183 = vtanh.f32 %v1263_v4  ;;  %v1827_v62 = vmul.f32 -1.442695, %v1263_v4  ;;  %v2062_v4 = vld [vmem:[%s2821_s7] sm:$0xff]  }
0x2402   :  { %v1265_v60 = vpop.f32.mrf.mxu1 }
0x2403   :  { %2185 = vpow2.f32 %v1827_v62  ;;  %v2063_v60 = vld [vmem:[%s2822_s9 + $0x38] sm:$0xff]  }
0x2404   :  { %v1973_v8 = vpop.f32.mrf.mxu1 }
0x2405   :  { %v2064_v8 = vld [vmem:[%s2822_s9 + $0x30] sm:$0xff]  }
0x240e   :  { %v2184_v0 = vpop.eup %2183 }
0x240f   :  { %1277 = vrot.lane.b32.xlu0 %v2184_v0, %s2221_s5  ;;  %v2065_v0 = vld [vmem:[%s2822_s9 + $0x28] sm:$0xff]  }
0x2410   :  { %v2186_v3 = vpop.eup %2185 }
0x2411   :  { %v1271_v13 = vadd.f32 1.0, %v2186_v3 }
0x2413   :  { %2187 = vrcp.f32 %v1271_v13 }
0x2420   :  { %v2188_v16 = vpop.eup %2187 }
0x2421   :  { %v1275_v6 = vmul.f32 %v2188_v16, %v2643_v25 }
0x2481   :  { %v1278_v5 = vpop.permute.xlu0 %1277 }
0x2482   :  { %v1280_v17 = vmul.f32 %v2188_v16, %v1278_v5  ;;  %v2067_v5 = vld [vmem:[%s2822_s9 + $0x18] sm:$0xff]  }
0x2484   :  { %1282 = vrot.lane.b32.xlu1 %v1280_v17, %s2221_s5  ;;  %v2068_v17 = vld [vmem:[%s2822_s9 + $0x10] sm:$0xff]  }
0x2488   :  { %1293 = vrot.lane.b32.xlu1 %v1220_v58, %s2224_s0 }
0x24f6   :  { %v1283_v9 = vpop.permute.xlu1 %1282 }
0x24f7   :  { %v2696_v10 = vadd.f32 %v1283_v9, %v1275_v6  ;;  %v2069_v9 = vld [vmem:[%s2822_s9 + $0x8] sm:$0xff]  }
0x24f9   :  { %2189 = vtanh.f32 %v2696_v10 }
0x24fa   :  { %v1294_v23 = vpop.permute.xlu1 %1293 }
0x2506   :  { %v2190_v11 = vpop.eup %2189 }
0x2507   :  { %1288 = vrot.lane.b32.xlu0 %v2190_v11, %s2221_s5  ;;  %v2071_v11 = vld [vmem:[%s2823_s11 + $0x38] sm:$0xff]  }
0x2579   :  { %v1289_v12 = vpop.permute.xlu0 %1288 }
0x257a   :  { %v1291_v21 = vmul.f32 %v2188_v16, %v1289_v12  ;;  %v2066_v16 = vld [vmem:[%s2822_s9 + $0x20] sm:$0xff]   ;;  %v2072_v12 = vld [vmem:[%s2823_s11 + $0x30] sm:$0xff]  }
0x257c   :  { %1297 = vrot.lane.b32.xlu0 %v1291_v21, %s2225_s6  ;;  %v2073_v21 = vld [vmem:[%s2823_s11 + $0x28] sm:$0xff]  }
0x25ee   :  { %v1298_v24 = vpop.permute.xlu0 %1297 }
0x25ef   :  { %v1300_v26 = vsel %vm96_vm0, %v1294_v23, %v1298_v24  ;;  %v2074_v23 = vld [vmem:[%s2823_s11 + $0x20] sm:$0xff]   ;;  %v2075_v24 = vld [vmem:[%s2823_s11 + $0x18] sm:$0xff]  }
0x25f0   :  { %v1301_v28 = vpack.c.bf16 %v1300_v26, %v1300_v26  ;;  %v2076_v26 = vld [vmem:[%s2823_s11 + $0x10] sm:$0xff]  }
0x25f2   :  { %1828 = vmatmul.mubr.msk.bf16.vlgmr.msra.gmra.mxu1 %vm239_vm2, %v1301_v28  ;;  %v1832_v28 = vld [vmem:[%s2824_s8] ss:$0 sm:$0xff] }
0x25f3   :  { %2006 = vmatprep.mubr.msk.bf16.mxu1 %vm2223_vm1, %v2222_v41  ;;  %1991 = vmatpush3.bf16.msra.mxu1 %v2063_v60 }
0x25f4   :  { %1992 = vmatprep.subr.bf16.mxu1 %v2222_v41 }
0x25f7   :  { %1993 = vmatpush3.bf16.msra.mxu1 %v2064_v8 }
0x25f8   :  { %1994 = vmatprep.subr.bf16.mxu1 %v2222_v41 }
0x25fb   :  { %1995 = vmatpush3.bf16.msra.mxu1 %v2065_v0 }
0x25fc   :  { %1996 = vmatprep.subr.bf16.mxu1 %v2222_v41 }
0x25ff   :  { %1997 = vmatpush3.bf16.msra.mxu1 %v2066_v16 }
0x2600   :  { %1998 = vmatprep.subr.bf16.mxu1 %v2222_v41 }
0x2603   :  { %1999 = vmatpush3.bf16.msra.mxu1 %v2067_v5 }
0x2604   :  { %2000 = vmatprep.subr.bf16.mxu1 %v2222_v41 }
0x2607   :  { %2001 = vmatpush3.bf16.msra.mxu1 %v2068_v17 }
0x2608   :  { %2002 = vmatprep.subr.bf16.mxu1 %v2222_v41 }
0x260b   :  { %2003 = vmatpush3.bf16.msra.mxu1 %v2069_v9 }
0x260c   :  { %2004 = vmatprep.subr.bf16.mxu1 %v2222_v41 }
0x26b2   :  { %v1339_v25 = vpop.f32.mrf.mxu1 }
0x26b3   :  { %v1340_v32 = vadd.f32 %v1339_v25, %v2382_v19 }
0x26b4   :  { %v1341_v33 = vpop.f32.mrf.mxu1 }
0x26b5   :  { %v1346_v22 = vadd.f32 %v1340_v32, %v171_v30  ;;  %v1342_v51 = vadd.f32 %v1341_v33, %v2441_v55 }
0x26b6   :  { %v1343_v35 = vpop.f32.mrf.mxu1 }
0x26b7   :  { %2191 = vtanh.f32 %v1346_v22  ;;  %v1829_v27 = vmul.f32 -1.442695, %v1346_v22 }
0x26b8   :  { %v1344_v36 = vpop.f32.mrf.mxu1 }
0x26b9   :  { %2193 = vpow2.f32 %v1829_v27  ;;  %v2077_v36 = vld [vmem:[%s2823_s11 + $0x8] sm:$0xff]   ;;  %v1751_v27 = vld [vmem:[%s2825_s1] sm:$0xff] }
0x26c4   :  { %v2192_v37 = vpop.eup %2191 }
0x26c5   :  { %1356 = vrot.lane.b32.xlu1 %v2192_v37, %s2221_s5  ;;  %v2078_v37 = vld [vmem:[%s2823_s11] sm:$0xff]  }
0x26c6   :  { %v2194_v39 = vpop.eup %2193 }
0x26c7   :  { %v1350_v40 = vadd.f32 1.0, %v2194_v39  ;;  %v1836_v39 = vld [vmem:[%s2826_s10] ss:$0 sm:$0xff] }
0x26c9   :  { %2195 = vrcp.f32 %v1350_v40 }
0x26d6   :  { %v2196_v42 = vpop.eup %2195 }
0x26d7   :  { %v1354_v19 = vmul.f32 %v2196_v42, %v2662_v48 }
0x2737   :  { %v1357_v31 = vpop.permute.xlu1 %1356 }
0x2738   :  { %v1359_v44 = vmul.f32 %v2196_v42, %v1357_v31 }
0x273a   :  { %1361 = vrot.lane.b32.xlu0 %v1359_v44, %s2221_s5 }
0x27ac   :  { %v1362_v54 = vpop.permute.xlu0 %1361 }
0x27ad   :  { %v1364_v34 = vadd.f32 %v1362_v54, %v1354_v19 }
0x27af   :  { %2197 = vtanh.f32 %v1364_v34  ;;  %v1845_v34 = vld [vmem:[%s2827_s12] ss:$0 sm:$0xff] }
0x27bc   :  { %v2198_v43 = vpop.eup %2197 }
0x27bd   :  { %1367 = vrot.lane.b32.xlu1 %v2198_v43, %s2221_s5 }
0x282f   :  { %v1368_v45 = vpop.permute.xlu1 %1367 }
0x2830   :  { %v1370_v46 = vmul.f32 %v2196_v42, %v1368_v45 }
0x2832   :  { %v1371_v47 = vpack.c.bf16 %v1370_v46, %v1370_v46 }
0x2834   :  { %1373 = vrot.lane.b32.xlu0 %v1371_v47, %s2224_s0 }
0x28a6   :  { %v1374_v20 = vpop.permute.xlu0 %1373 }
0x28a7   :  { %1979 = vmatmul.mubr.msk.bf16.vlgmr.msra.gmra.mxu0 %vm96_vm0, %v1374_v20 }
0x28a8   :  { %1986 = vmatprep.mubr.msk.bf16.mxu0 %vm2223_vm1, %v2222_v41  ;;  %1983 = vmatpush3.bf16.msra.mxu0 %v2061_v53 }
0x28a9   :  { %1984 = vmatprep.subr.bf16.mxu0 %v2222_v41 }
0x28ac   :  { %1985 = vmatpush3.bf16.msra.mxu0 %v2062_v4 }
0x28ad   :  { %2010 = vmatprep.subr.bf16.mxu0 %v2222_v41 }
0x2967   :  { %v1412_v48 = vpop.f32.mrf.mxu0 }
0x2968   :  { %v1413_v50 = vadd.f32 %v1412_v48, %v1342_v51 }
0x2969   :  { %v1980_v57 = vpop.f32.mrf.mxu0 }
0x296a   :  { %2199 = vtanh.f32 %v1413_v50  ;;  %v1831_v61 = vmul.f32 -1.442695, %v1413_v50  ;;  %v1747_v57 = vand.u32 127, %v189_v14 }
0x296b   :  { %v1415_v58 = vpop.f32.mrf.mxu0 }
0x296c   :  { %2201 = vpow2.f32 %v1831_v61  ;;  %vm1749_vm4 = vcmp.eq.s32.totalorder %v1747_v57, 0  ;;  %vm1771_vm7 = vcmp.eq.s32.totalorder %v1747_v57, 1 }
0x296d   :  { %v1981_v18 = vpop.f32.mrf.mxu0  ;;  %vm1750_vm5 = vmand %vm1748_vm3, %vm1749_vm4 }
0x296e   :  { %vm1772_vm8 = vmand %vm1770_vm6, %vm1771_vm7 }
0x2977   :  { %v2200_v59 = vpop.eup %2199 }
0x2978   :  { %1427 = vrot.lane.b32.xlu1 %v2200_v59, %s2221_s5 }
0x2979   :  { %v2202_v2 = vpop.eup %2201 }
0x297a   :  { %v1421_v49 = vadd.f32 1.0, %v2202_v2 }
0x297c   :  { %2203 = vrcp.f32 %v1421_v49 }
0x2989   :  { %v2204_v38 = vpop.eup %2203 }
0x298a   :  { %v1425_v55 = vmul.f32 %v2204_v38, %v2696_v10  ;;  %v2070_v10 = vld [vmem:[%s2822_s9] sm:$0xff]  }
0x298b   :  { %2005 = vmatpush3.bf16.msra.mxu1 %v2070_v10 }
0x29ea   :  { %v1428_v56 = vpop.permute.xlu1 %1427 }
0x29eb   :  { %v1430_v1 = vmul.f32 %v2204_v38, %v1428_v56 }
0x29ed   :  { %1432 = vrot.lane.b32.xlu0 %v1430_v1, %s2221_s5 }
0x2a5f   :  { %v1433_v52 = vpop.permute.xlu0 %1432 }
0x2a60   :  { %v1435_v63 = vadd.f32 %v1433_v52, %v1425_v55 }
0x2a62   :  { %2205 = vtanh.f32 %v1435_v63 }
0x2a6f   :  { %v2206_v7 = vpop.eup %2205 }
0x2a70   :  { %1438 = vrot.lane.b32.xlu1 %v2206_v7, %s2221_s5 }
0x2a74   :  { %1754 = vperm.xlu1 %2039, %v1751_v27  }
0x2ae2   :  { %v1439_v62 = vpop.permute.xlu1 %1438 }
0x2ae3   :  { %v1441_v3 = vmul.f32 %v2204_v38, %v1439_v62 }
0x2ae5   :  { %v1442_v13 = vpack.c.bf16 %v1441_v3, %v1441_v3 }
0x2ae7   :  { %1455 = vrot.lane.b32.xlu0 %v1442_v13, %s2224_s0 }
0x2aef   :  { %v1755_v58 = vpop.permute.xlu1 %1754 }
0x2b59   :  { %v1456_v6 = vpop.permute.xlu0 %1455 }
0x2b5a   :  { %1987 = vmatmul.mubr.msk.bf16.vlgmr.msra.gmra.mxu0 %vm96_vm0, %v1456_v6 }
0x2b5b   :  { %2026 = vmatprep.mubr.msk.bf16.mxu0 %vm2223_vm1, %v2222_v41  ;;  %2011 = vmatpush3.bf16.msra.mxu0 %v2071_v11 }
0x2b5c   :  { %2012 = vmatprep.subr.bf16.mxu0 %v2222_v41 }
0x2b5f   :  { %2013 = vmatpush3.bf16.msra.mxu0 %v2072_v12 }
0x2b60   :  { %2014 = vmatprep.subr.bf16.mxu0 %v2222_v41 }
0x2b63   :  { %2015 = vmatpush3.bf16.msra.mxu0 %v2073_v21 }
0x2b64   :  { %2016 = vmatprep.subr.bf16.mxu0 %v2222_v41 }
0x2b67   :  { %2017 = vmatpush3.bf16.msra.mxu0 %v2074_v23 }
0x2b68   :  { %2018 = vmatprep.subr.bf16.mxu0 %v2222_v41 }
0x2b6b   :  { %2019 = vmatpush3.bf16.msra.mxu0 %v2075_v24 }
0x2b6c   :  { %2020 = vmatprep.subr.bf16.mxu0 %v2222_v41 }
0x2b6f   :  { %2021 = vmatpush3.bf16.msra.mxu0 %v2076_v26 }
0x2b70   :  { %2022 = vmatprep.subr.bf16.mxu0 %v2222_v41 }
0x2b73   :  { %2023 = vmatpush3.bf16.msra.mxu0 %v2077_v36 }
0x2b74   :  { %2024 = vmatprep.subr.bf16.mxu0 %v2222_v41 }
0x2b77   :  { %2025 = vmatpush3.bf16.msra.mxu0 %v2078_v37 }
0x2c1a   :  { %v1506_v25 = vpop.f32.mrf.mxu0 }
0x2c1b   :  { %v1507_v29 = vadd.f32 %v1832_v28, %v1506_v25 }
0x2c1c   :  { %v1988_v30 = vpop.f32.mrf.mxu0 }
0x2c1d   :  { %v1512_v32 = vmax.f32 %v1507_v29, 0.0 }
0x2c1e   :  { %v1509_v33 = vpop.f32.mrf.mxu0 }
0x2c1f   :  { %v1513_v22 = vpack.c.bf16 %v1512_v32, %v1512_v32 }
0x2c20   :  { %v1989_v35 = vpop.f32.mrf.mxu0 }
0x2c21   :  { %2007 = vmatmul.mubr.bf16.vlgmr.msra.gmra.mxu1 %v1513_v22 }
0x2ce1   :  { %v1619_v40 = vpop.f32.mrf.mxu1 }
0x2ce2   :  { %v1620_v42 = vadd.f32 %v1836_v39, %v1619_v40 }
0x2ce3   :  { %v2008_v31 = vpop.f32.mrf.mxu1 }
0x2ce4   :  { %v1625_v44 = vmax.f32 %v1620_v42, 0.0 }
0x2ce5   :  { %v1622_v19 = vpop.f32.mrf.mxu1 }
0x2ce6   :  { %v1626_v41 = vpack.c.bf16 %v1625_v44, %v1625_v44 }
0x2ce7   :  { %v2009_v54 = vpop.f32.mrf.mxu1 }
0x2ce8   :  { %2027 = vmatmul.mubr.bf16.vlgmr.msra.gmra.mxu0 %v1626_v41 }
0x2da8   :  { %v1732_v43 = vpop.f32.mrf.mxu0 }
0x2da9   :  { %v1733_v45 = vadd.f32 %v1845_v34, %v1732_v43 }
0x2daa   :  { %v2028_v46 = vpop.f32.mrf.mxu0 }
0x2dab   :  { %v1854_v47 = vmul.f32 -1.442695, %v1733_v45 }
0x2dac   :  { %v1735_v20 = vpop.f32.mrf.mxu0 }
0x2dad   :  { %2207 = vpow2.f32 %v1854_v47 }
0x2dae   :  { %v2029_v51 = vpop.f32.mrf.mxu0 }
0x2dba   :  { %v2208_v48 = vpop.eup %2207 }
0x2dbb   :  { %v1741_v50 = vadd.f32 1.0, %v2208_v48 }
0x2dbd   :  { %2209 = vrcp.f32 %v1741_v50 }
0x2dca   :  { %v2210_v18 = vpop.eup %2209 }
0x2dcb   :  { %v1757_v59 = vsub.f32 %v2210_v18, %v1755_v58 }
0x2dcd   :  { %v1758_v61 = vsel %vm1750_vm5, %v1757_v59, 0.0 }
0x2dce   :  { %v1759_v2 = vmul.f32 %v1758_v61, %v1758_v61 }
0x2dd0   :  { %1760 = vadd.xlane.f32.xlu0 %v1759_v2 }
0x2e59   :  { %v1761_v49 = vpop.xlane.xlu0 %1760 }
0x2e5a   :  { %v1762_v38 = vrot.slane %v1761_v49, 4 }
0x2e5c   :  { %v1763_v56 = vadd.f32 %v1762_v38, %v1761_v49 }
0x2e5e   :  { %v1764_v1 = vrot.slane %v1763_v56, 2 }
0x2e60   :  { %v1765_v55 = vadd.f32 %v1764_v1, %v1763_v56 }
0x2e62   :  { %v1766_v52 = vrot.slane %v1765_v55, 1 }
0x2e64   :  { %v1767_v63 = vadd.f32 %v1766_v52, %v1765_v55 }
0x2e66   :  { %2030 = vpush %v1767_v63 }
0x2e97   :  { %s2031_s1 = spop %2030 }
0x2e98   :  { %s1769_s10 = smul.f32 0.5, %s2031_s1 }
0x2e9a   :  { %v1773_v14 = vstv %s1769_s10 }
0x2e9b   :  { %v1774_v53 = vsel %vm1772_vm8, %v1773_v14, %v2210_v18 }
0x2e9c   :  { %1775 = vst [vmem:[%s2828_s13] sm:$0xff] %v1774_v53 }

</bundles_post_ra>
